<compile_context>
chip_gen: v5e
topology: v5e:2x2
jax: 0.10.0
libtpu: 0.0.40
codegen_flags: <defaults>
</compile_context>

<pallas_src>
import functools
import math

import jax
import jax.numpy as jnp
from jax.experimental import pallas as pl
from jax.experimental.pallas import tpu as pltpu


# ----------------------------------------------------------------------------
# Helpers (spec construction, VMEM sizing, block selection)
# ----------------------------------------------------------------------------
def _spec(shape, index_map, buffers=None):
    """BlockSpec helper; buffers=1 single-buffers call-invariant operands."""
    if buffers is None:
        return pl.BlockSpec(shape, index_map)
    try:
        return pl.BlockSpec(shape, index_map, pipeline_mode=pl.Buffered(buffers))
    except (TypeError, AttributeError):
        # Older jax without pipeline_mode / Buffered: default double buffering.
        return pl.BlockSpec(shape, index_map)


def _physical_vmem_bytes():
    try:
        return int(pltpu.get_tpu_info().vmem_capacity_bytes)
    except Exception:
        return 64 * 1024 * 1024  # conservative: v7x per-TensorCore VMEM


def _vmem_bytes_estimate(bb, kv_tile, n2, dim, heads, dim_head, in_bytes, cd_bytes):
    """Rough per-grid-step VMEM footprint (bytes), incl. pipeline buffers."""
    f32 = 4
    inner = heads * dim_head
    hb = heads * bb
    blocks = 2 * (bb * kv_tile * dim * in_bytes       # x kv chunk (double-buffered)
                  + bb * n2 * dim * in_bytes          # latents block
                  + bb * n2 * dim * in_bytes)         # output block
    consts = ((dim * 3 * inner + dim * 2 * inner + inner * dim) * cd_bytes
              + 4 * dim * f32)                        # single-buffered weights + LN
    scratch = (hb * n2 * dim_head * (cd_bytes + f32)  # q + acc
               + 2 * hb * n2 * 128 * f32)             # m + l (lane-padded)
    interm = (bb * kv_tile * dim * (f32 + cd_bytes)          # x chunk f32 temp + LN out
              + 2 * bb * kv_tile * 2 * inner * cd_bytes      # fused k/v proj + head split
              + hb * n2 * kv_tile * (2 * f32 + cd_bytes)     # scores / probs
              + bb * n2 * (dim * f32 + 2 * 3 * inner * cd_bytes))
    return int(1.2 * (blocks + consts + scratch + interm))


def _choose_blocking(b, n1, n2, dim, heads, dim_head, in_bytes, cd_bytes,
                     vmem_budget, batch_block=None, kv_tile=None):
    def divisors_desc(n, cap):
        cap = max(1, min(n, cap))
        return [d for d in range(cap, 0, -1) if n % d == 0]

    if batch_block is not None:
        bb_cands = [batch_block]
    else:
        cands = divisors_desc(b, 8)
        # Prefer >= 2 steps on the "parallel" batch axis (v7x megacore sharding).
        pref = [d for d in cands if b // d >= 2]
        bb_cands = (pref + [d for d in cands if d not in pref]) or [b]

    if kv_tile is not None:
        tile_cands = [kv_tile]
    else:
        tile_cands = [t for t in divisors_desc(n1, 512)
                      if t == n1 or t % 8 == 0] or [n1]

    for bb in bb_cands:
        for t in tile_cands:
            if _vmem_bytes_estimate(bb, t, n2, dim, heads, dim_head,
                                    in_bytes, cd_bytes) <= vmem_budget:
                return bb, t
    return bb_cands[-1], tile_cands[-1]


# ----------------------------------------------------------------------------
# Kernel
# ----------------------------------------------------------------------------
def _perceiver_attn_kernel(x_ref, lat_ref, g1_ref, b1_ref, g2_ref, b2_ref,
                           wlat_ref, wx_ref, wout_ref, out_ref,
                           q_scr, m_scr, l_scr, acc_scr,
                           *, heads, dim_head, bb, kv_tile, n2, dim, cdtype):
    """Grid = (batch blocks, kv chunks). Online softmax over kv chunks; the
    latent-key block is folded into the kv==0 step. LayerNorm/softmax math is
    f32, MXU operands are `cdtype` with f32 accumulation."""
    inner = heads * dim_head
    j = pl.program_id(1)
    n_kv = pl.num_programs(1)

    def layernorm(vals, g_ref, b_ref):
        # f32 statistics, output emitted directly in the compute dtype.
        t = vals.astype(jnp.float32)
        g = g_ref[...].astype(jnp.float32)
        beta = b_ref[...].astype(jnp.float32)
        mu = jnp.mean(t, axis=-1, keepdims=True)
        var = jnp.mean(jnp.square(t - mu), axis=-1, keepdims=True)
        return ((t - mu) * jax.lax.rsqrt(var + 1e-5) * g + beta).astype(cdtype)

    def split_heads(t, n, offset):
        # (bb*n, cols) -> (heads*bb, n, dh); head h comes from lane range
        # [offset + h*dh, offset + (h+1)*dh) and occupies rows [h*bb, (h+1)*bb).
        parts = [
            t[:, offset + h * dim_head: offset + (h + 1) * dim_head]
            .reshape(bb, n, dim_head)
            for h in range(heads)
        ]
        return jnp.concatenate(parts, axis=0)

    def online_attend(kh, vh):
        # One online-softmax update with keys/values (heads*bb, nk, dh).
        s = jnp.einsum('bqd,bkd->bqk', q_scr[...], kh,
                       preferred_element_type=jnp.float32)
        m_prev = m_scr[...]
        m_new = jnp.maximum(m_prev, jnp.max(s, axis=-1, keepdims=True))
        alpha = jnp.exp(m_prev - m_new)
        p = jnp.exp(s - m_new)
        l_scr[...] = alpha * l_scr[...] + jnp.sum(p, axis=-1, keepdims=True)
        acc_scr[...] = alpha * acc_scr[...] + jnp.einsum(
            'bqk,bkd->bqd', p.astype(cdtype), vh,
            preferred_element_type=jnp.float32)
        m_scr[...] = m_new

    # ---- kv step 0: latent LayerNorm, fused Q/K/V projection, state init, and
    # the latent-key block processed as the first online-softmax chunk.
    @pl.when(j == 0)
    def _():
        ln = layernorm(lat_ref[...], g2_ref, b2_ref).reshape(bb * n2, dim)
        qkv = jnp.dot(ln, wlat_ref[...],
                      preferred_element_type=jnp.float32).astype(cdtype)
        q_scr[...] = split_heads(qkv, n2, 0)
        m_scr[...] = jnp.full(m_scr.shape, -jnp.inf, dtype=m_scr.dtype)
        l_scr[...] = jnp.zeros(l_scr.shape, dtype=l_scr.dtype)
        acc_scr[...] = jnp.zeros(acc_scr.shape, dtype=acc_scr.dtype)
        online_attend(split_heads(qkv, n2, inner),
                      split_heads(qkv, n2, 2 * inner))

    # ---- every kv step: LayerNorm the x chunk, fused K/V projection, update.
    xn = layernorm(x_ref[...], g1_ref, b1_ref).reshape(bb * kv_tile, dim)
    kv = jnp.dot(xn, wx_ref[...],
                 preferred_element_type=jnp.float32).astype(cdtype)
    online_attend(split_heads(kv, kv_tile, 0),
                  split_heads(kv, kv_tile, inner))

    # ---- last kv step: normalize, fold head merge into Wout, store.
    @pl.when(j == n_kv - 1)
    def _():
        denom = l_scr[...]
        inv = pl.reciprocal(denom, approx=True)     # EUP fast path
        inv = inv * (2.0 - denom * inv)              # one Newton step (~f32 acc.)
        o = (acc_scr[...] * inv).astype(cdtype)      # (heads*bb, n2, dh)
        o = o.reshape(heads, bb * n2, dim_head)      # leading-dim regroup only
        out = jnp.sum(
            jnp.einsum('hmd,hdD->hmD', o, wout_ref[...],
                       preferred_element_type=jnp.float32),
            axis=0)                                   # (bb*n2, dim)
        out_ref[...] = out.reshape(bb, n2, dim).astype(out_ref.dtype)


# ----------------------------------------------------------------------------
# Wrapper
# ----------------------------------------------------------------------------
def perceiver_attention(x, latents, params, *, heads, dim_head,
                        compute_dtype=None, batch_block=None, kv_tile=None,
                        kv_chunk_buffers=2):
    """x: (b, n1, D), latents: (b, n2, D) -> (b, n2, D)."""
    b, n1, dim = x.shape
    bl, n2, dl = latents.shape
    assert bl == b and dl == dim
    inner = heads * dim_head

    cdtype = jnp.dtype(compute_dtype) if compute_dtype is not None else jnp.dtype(x.dtype)
    in_bytes = jnp.dtype(x.dtype).itemsize
    cd_bytes = cdtype.itemsize

    # Generation-aware VMEM budget (v7x: ~51 MiB, v5e/v6e: ~102 MiB).
    phys_vmem = _physical_vmem_bytes()
    vmem_limit = int(0.80 * phys_vmem)
    bb, tile = _choose_blocking(b, n1, n2, dim, heads, dim_head,
                                in_bytes, cd_bytes,
                                vmem_budget=int(0.85 * vmem_limit),
                                batch_block=batch_block, kv_tile=kv_tile)
    assert b % bb == 0, (b, bb)
    assert n1 % tile == 0, (n1, tile)

    # Fold the attention scale (dim_head**-0.25 on both q and k) into the
    # weights, fuse [Wq|Wk|Wv] (latent side) and [Wk|Wv] (x side), and reshape
    # Wout to (heads, dh, dim) so the head merge is folded into its einsum.
    scale = 1.0 / math.sqrt(math.sqrt(dim_head))
    wq = params["wq"] * scale
    wk = params["wkv"][:, :inner] * scale
    wv = params["wkv"][:, inner:]
    w_lat = jnp.concatenate([wq, wk, wv], axis=1).astype(cdtype)    # (dim, 3*inner)
    w_x = jnp.concatenate([wk, wv], axis=1).astype(cdtype)          # (dim, 2*inner)
    wout3 = params["wout"].reshape(heads, dim_head, dim).astype(cdtype)
    g1 = params["ln1_g"].astype(jnp.float32)
    b1 = params["ln1_b"].astype(jnp.float32)
    g2 = params["ln2_g"].astype(jnp.float32)
    b2 = params["ln2_b"].astype(jnp.float32)

    kernel = functools.partial(_perceiver_attn_kernel, heads=heads,
                               dim_head=dim_head, bb=bb, kv_tile=tile,
                               n2=n2, dim=dim, cdtype=cdtype)

    def const(shape):
        return _spec(shape, lambda i, j: (0,) * len(shape), buffers=1)

    grid = (b // bb, n1 // tile)
    return pl.pallas_call(
        kernel,
        out_shape=jax.ShapeDtypeStruct((b, n2, dim), latents.dtype),
        grid_spec=pltpu.PrefetchScalarGridSpec(
            num_scalar_prefetch=0,
            grid=grid,
            in_specs=[
                _spec((bb, tile, dim), lambda i, j: (i, j, 0),
                      buffers=kv_chunk_buffers),                 # x kv chunk
                pl.BlockSpec((bb, n2, dim), lambda i, j: (i, 0, 0)),  # latents
                const((1, dim)), const((1, dim)),                # ln1 gamma/beta
                const((1, dim)), const((1, dim)),                # ln2 gamma/beta
                const((dim, 3 * inner)),                         # [Wq|Wk|Wv] (scaled)
                const((dim, 2 * inner)),                         # [Wk|Wv]    (scaled k)
                const((heads, dim_head, dim)),                   # Wout (head-split)
            ],
            out_specs=pl.BlockSpec((bb, n2, dim), lambda i, j: (i, 0, 0)),
            scratch_shapes=[
                pltpu.VMEM((heads * bb, n2, dim_head), cdtype),       # q
                pltpu.VMEM((heads * bb, n2, 1), jnp.float32),         # running max
                pltpu.VMEM((heads * bb, n2, 1), jnp.float32),         # running sum
                pltpu.VMEM((heads * bb, n2, dim_head), jnp.float32),  # accumulator
            ]),
        compiler_params=pltpu.CompilerParams(
            dimension_semantics=("parallel", "arbitrary"),
            vmem_limit_bytes=vmem_limit),
    )(x, latents, g1, b1, g2, b2, w_lat, w_x, wout3)


# ----------------------------------------------------------------------------
# Pure-JAX reference (mirrors the PyTorch forward exactly)
# ----------------------------------------------------------------------------
def perceiver_attention_ref(x, latents, params, *, heads, dim_head):
    inner = heads * dim_head

    def layernorm(t, g, b):
        mu = jnp.mean(t, axis=-1, keepdims=True)
        var = jnp.mean((t - mu) ** 2, axis=-1, keepdims=True)
        return (t - mu) / jnp.sqrt(var + 1e-5) * g[0] + b[0]

    xn = layernorm(x, params["ln1_g"], params["ln1_b"])
    latn = layernorm(latents, params["ln2_g"], params["ln2_b"])
    b, l, _ = latn.shape
    q = latn @ params["wq"]
    kv = jnp.concatenate([xn, latn], axis=-2) @ params["wkv"]
    k, v = kv[..., :inner], kv[..., inner:]

    def split_heads(t):
        bs, length, _ = t.shape
        return jnp.transpose(t.reshape(bs, length, heads, dim_head), (0, 2, 1, 3))

    q, k, v = split_heads(q), split_heads(k), split_heads(v)
    scale = 1.0 / math.sqrt(math.sqrt(dim_head))
    w = (q * scale) @ jnp.swapaxes(k * scale, -2, -1)
    w = jax.nn.softmax(w.astype(jnp.float32), axis=-1).astype(w.dtype)
    out = w @ v
    out = jnp.transpose(out, (0, 2, 1, 3)).reshape(b, l, -1)
    return out @ params["wout"]


if __name__ == "__main__":
    # Small shapes consistent with the module (seq lengths multiples of 8 so the
    # batch/seq folds are tile-aligned).
    B, N1, N2, DIM = 2, 16, 8, 32
    HEADS, DIM_HEAD = 4, 16
    INNER = HEADS * DIM_HEAD

    key = jax.random.PRNGKey(0)
    ks = jax.random.split(key, 8)

    x = jax.random.normal(ks[0], (B, N1, DIM), dtype=jnp.float32)
    latents = jax.random.normal(ks[1], (B, N2, DIM), dtype=jnp.float32)

    params = {
        "ln1_g": 1.0 + 0.1 * jax.random.normal(ks[2], (1, DIM), dtype=jnp.float32),
        "ln1_b": 0.1 * jax.random.normal(ks[3], (1, DIM), dtype=jnp.float32),
        "ln2_g": 1.0 + 0.1 * jax.random.normal(ks[4], (1, DIM), dtype=jnp.float32),
        "ln2_b": 0.1 * jax.random.normal(ks[5], (1, DIM), dtype=jnp.float32),
        # stored as (in_dim, out_dim), i.e. torch weight transposed
        "wq": jax.random.normal(ks[6], (DIM, INNER), dtype=jnp.float32) / math.sqrt(DIM),
        "wkv": jax.random.normal(ks[7], (DIM, 2 * INNER), dtype=jnp.float32) / math.sqrt(DIM),
        "wout": jax.random.normal(jax.random.fold_in(key, 99), (INNER, DIM),
                                  dtype=jnp.float32) / math.sqrt(INNER),
    }

    ref = perceiver_attention_ref(x, latents, params, heads=HEADS, dim_head=DIM_HEAD)

    # f32 compute, multi-chunk flash path (kv_tile=8 -> 2 KV chunks, 2 batch
    # grid steps). Tight tolerance: approx reciprocal is Newton-refined.
    out = perceiver_attention(x, latents, params, heads=HEADS, dim_head=DIM_HEAD,
                              kv_tile=8)
    out = jax.block_until_ready(out)
    assert out.shape == (B, N2, DIM)
    assert jnp.allclose(out, ref, atol=5e-4, rtol=5e-4), \
        float(jnp.max(jnp.abs(out - ref)))

    # bf16 MXU-compute knob on f32 inputs (LayerNorm/softmax still f32),
    # default KV tiling (single chunk). Loose tolerance vs. the f32 reference.
    out_b = jax.block_until_ready(
        perceiver_attention(x, latents, params, heads=HEADS, dim_head=DIM_HEAD,
                            compute_dtype=jnp.bfloat16))
    assert out_b.shape == (B, N2, DIM)
    assert jnp.allclose(out_b, ref, atol=5e-2, rtol=5e-2), \
        float(jnp.max(jnp.abs(out_b - ref)))

    print("KERNEL_OK")
</pallas_src>

<mosaic_0001>
module attributes {stable_mosaic.version = 11 : i64} {
  func.func @_perceiver_attn_kernel(%arg0: i32, %arg1: i32, %arg2: memref<1x8x32xf32, #tpu.memory_space<vmem>>, %arg3: memref<1x8x32xf32, #tpu.memory_space<vmem>>, %arg4: memref<1x32xf32, #tpu.memory_space<vmem>>, %arg5: memref<1x32xf32, #tpu.memory_space<vmem>>, %arg6: memref<1x32xf32, #tpu.memory_space<vmem>>, %arg7: memref<1x32xf32, #tpu.memory_space<vmem>>, %arg8: memref<32x192xf32, #tpu.memory_space<vmem>>, %arg9: memref<32x128xf32, #tpu.memory_space<vmem>>, %arg10: memref<4x16x32xf32, #tpu.memory_space<vmem>>, %arg11: memref<1x8x32xf32, #tpu.memory_space<vmem>>, %arg12: memref<4x8x16xf32, #tpu.memory_space<vmem>>, %arg13: memref<4x8x1xf32, #tpu.memory_space<vmem>>, %arg14: memref<4x8x1xf32, #tpu.memory_space<vmem>>, %arg15: memref<4x8x16xf32, #tpu.memory_space<vmem>>) attributes {dimension_semantics = [#tpu.dimension_semantics<parallel>, #tpu.dimension_semantics<arbitrary>], iteration_bounds = array<i64: 2, 2>, scalar_prefetch = 0 : i64, scratch_operands = 4 : i64, tpu.core_type = #tpu.core_type<tc>, window_params = [{pipeline_mode = #tpu.pipeline_mode<double_buffered>, transform_indices = @transform_0, window_bounds = array<i64: 1, 8, 32>}, {transform_indices = @transform_1, window_bounds = array<i64: 1, 8, 32>}, {pipeline_mode = #tpu.pipeline_mode<synchronous>, transform_indices = @transform_2, window_bounds = array<i64: 1, 32>}, {pipeline_mode = #tpu.pipeline_mode<synchronous>, transform_indices = @transform_3, window_bounds = array<i64: 1, 32>}, {pipeline_mode = #tpu.pipeline_mode<synchronous>, transform_indices = @transform_4, window_bounds = array<i64: 1, 32>}, {pipeline_mode = #tpu.pipeline_mode<synchronous>, transform_indices = @transform_5, window_bounds = array<i64: 1, 32>}, {pipeline_mode = #tpu.pipeline_mode<synchronous>, transform_indices = @transform_6, window_bounds = array<i64: 32, 192>}, {pipeline_mode = #tpu.pipeline_mode<synchronous>, transform_indices = @transform_7, window_bounds = array<i64: 32, 128>}, {pipeline_mode = #tpu.pipeline_mode<synchronous>, transform_indices = @transform_8, window_bounds = array<i64: 4, 16, 32>}, {transform_indices = @transform_9, window_bounds = array<i64: 1, 8, 32>}]} {
    %c0_i32 = arith.constant 0 : i32
    %0 = arith.cmpi eq, %arg1, %c0_i32 : i32
    %1 = arith.extui %0 : i1 to i32
    %c0_i32_0 = arith.constant 0 : i32
    %2 = arith.cmpi ne, %1, %c0_i32_0 : i32
    scf.if %2 {
      %c0_40 = arith.constant 0 : index
      %c0_41 = arith.constant 0 : index
      %c0_42 = arith.constant 0 : index
      %78 = vector.load %arg3[%c0_40, %c0_41, %c0_42] : memref<1x8x32xf32, #tpu.memory_space<vmem>>, vector<1x8x32xf32>
      %c0_43 = arith.constant 0 : index
      %c0_44 = arith.constant 0 : index
      %79 = vector.load %arg6[%c0_43, %c0_44] : memref<1x32xf32, #tpu.memory_space<vmem>>, vector<1x32xf32>
      %c0_45 = arith.constant 0 : index
      %c0_46 = arith.constant 0 : index
      %80 = vector.load %arg7[%c0_45, %c0_46] : memref<1x32xf32, #tpu.memory_space<vmem>>, vector<1x32xf32>
      %cst_47 = arith.constant dense<0.000000e+00> : vector<1x8xf32>
      %81 = vector.multi_reduction <add>, %78, %cst_47 [2] : vector<1x8x32xf32> to vector<1x8xf32>
      %82 = vector.shape_cast %81 : vector<1x8xf32> to vector<1x8x1xf32>
      %cst_48 = arith.constant 3.200000e+01 : f32
      %83 = vector.broadcast %cst_48 : f32 to vector<1x8x1xf32>
      %84 = arith.divf %82, %83 : vector<1x8x1xf32>
      %85 = vector.broadcast %84 : vector<1x8x1xf32> to vector<1x8x32xf32>
      %86 = arith.subf %78, %85 : vector<1x8x32xf32>
      %87 = arith.mulf %86, %86 : vector<1x8x32xf32>
      %cst_49 = arith.constant dense<0.000000e+00> : vector<1x8xf32>
      %88 = vector.multi_reduction <add>, %87, %cst_49 [2] : vector<1x8x32xf32> to vector<1x8xf32>
      %89 = vector.shape_cast %88 : vector<1x8xf32> to vector<1x8x1xf32>
      %cst_50 = arith.constant 3.200000e+01 : f32
      %90 = vector.broadcast %cst_50 : f32 to vector<1x8x1xf32>
      %91 = arith.divf %89, %90 : vector<1x8x1xf32>
      %92 = vector.broadcast %84 : vector<1x8x1xf32> to vector<1x8x32xf32>
      %93 = arith.subf %78, %92 : vector<1x8x32xf32>
      %cst_51 = arith.constant 9.99999974E-6 : f32
      %94 = vector.broadcast %cst_51 : f32 to vector<1x8x1xf32>
      %95 = arith.addf %91, %94 : vector<1x8x1xf32>
      %96 = math.rsqrt %95 : vector<1x8x1xf32>
      %97 = vector.broadcast %96 : vector<1x8x1xf32> to vector<1x8x32xf32>
      %98 = arith.mulf %93, %97 : vector<1x8x32xf32>
      %99 = vector.shape_cast %79 : vector<1x32xf32> to vector<1x1x32xf32>
      %100 = vector.broadcast %99 : vector<1x1x32xf32> to vector<1x8x32xf32>
      %101 = arith.mulf %98, %100 : vector<1x8x32xf32>
      %102 = vector.shape_cast %80 : vector<1x32xf32> to vector<1x1x32xf32>
      %103 = vector.broadcast %102 : vector<1x1x32xf32> to vector<1x8x32xf32>
      %104 = arith.addf %101, %103 : vector<1x8x32xf32>
      %105 = vector.shape_cast %104 : vector<1x8x32xf32> to vector<8x32xf32>
      %c0_52 = arith.constant 0 : index
      %c0_53 = arith.constant 0 : index
      %106 = vector.load %arg8[%c0_52, %c0_53] : memref<32x192xf32, #tpu.memory_space<vmem>>, vector<32x192xf32>
      %cst_54 = arith.constant dense<0.000000e+00> : vector<8x192xf32>
      %107 = tpu.matmul %105, %106, %cst_54 {dimension_numbers = #tpu.dot_dimension_numbers<[1], [0], [0], [1], [0, 0, 1, 1], [], []>} : vector<8x32xf32>, vector<32x192xf32>, vector<8x192xf32> -> vector<8x192xf32>
      %108 = vector.extract_strided_slice %107 {offsets = [0, 0], sizes = [8, 16], strides = [1, 1]} : vector<8x192xf32> to vector<8x16xf32>
      %109 = vector.shape_cast %108 : vector<8x16xf32> to vector<1x8x16xf32>
      %110 = vector.extract_strided_slice %107 {offsets = [0, 16], sizes = [8, 16], strides = [1, 1]} : vector<8x192xf32> to vector<8x16xf32>
      %111 = vector.shape_cast %110 : vector<8x16xf32> to vector<1x8x16xf32>
      %112 = vector.extract_strided_slice %107 {offsets = [0, 32], sizes = [8, 16], strides = [1, 1]} : vector<8x192xf32> to vector<8x16xf32>
      %113 = vector.shape_cast %112 : vector<8x16xf32> to vector<1x8x16xf32>
      %114 = vector.extract_strided_slice %107 {offsets = [0, 48], sizes = [8, 16], strides = [1, 1]} : vector<8x192xf32> to vector<8x16xf32>
      %115 = vector.shape_cast %114 : vector<8x16xf32> to vector<1x8x16xf32>
      %116 = tpu.concatenate %109, %111, %113, %115 in 0 : vector<1x8x16xf32>, vector<1x8x16xf32>, vector<1x8x16xf32>, vector<1x8x16xf32> -> vector<4x8x16xf32>
      %c0_55 = arith.constant 0 : index
      %c0_56 = arith.constant 0 : index
      %c0_57 = arith.constant 0 : index
      %117 = vector.load %arg12[%c0_55, %c0_56, %c0_57] : memref<4x8x16xf32, #tpu.memory_space<vmem>>, vector<4x8x16xf32>
      tpu.vector_store %arg12[%c0_55, %c0_56, %c0_57], %116 {strides = array<i32>} : memref<4x8x16xf32, #tpu.memory_space<vmem>>, vector<4x8x16xf32>,
      %cst_58 = arith.constant 0xFF800000 : f32
      %118 = vector.broadcast %cst_58 : f32 to vector<4x8x1xf32>
      %c0_59 = arith.constant 0 : index
      %c0_60 = arith.constant 0 : index
      %c0_61 = arith.constant 0 : index
      %119 = vector.load %arg13[%c0_59, %c0_60, %c0_61] : memref<4x8x1xf32, #tpu.memory_space<vmem>>, vector<4x8x1xf32>
      tpu.vector_store %arg13[%c0_59, %c0_60, %c0_61], %118 {strides = array<i32>} : memref<4x8x1xf32, #tpu.memory_space<vmem>>, vector<4x8x1xf32>,
      %cst_62 = arith.constant 0.000000e+00 : f32
      %120 = vector.broadcast %cst_62 : f32 to vector<4x8x1xf32>
      %c0_63 = arith.constant 0 : index
      %c0_64 = arith.constant 0 : index
      %c0_65 = arith.constant 0 : index
      %121 = vector.load %arg14[%c0_63, %c0_64, %c0_65] : memref<4x8x1xf32, #tpu.memory_space<vmem>>, vector<4x8x1xf32>
      tpu.vector_store %arg14[%c0_63, %c0_64, %c0_65], %120 {strides = array<i32>} : memref<4x8x1xf32, #tpu.memory_space<vmem>>, vector<4x8x1xf32>,
      %cst_66 = arith.constant 0.000000e+00 : f32
      %122 = vector.broadcast %cst_66 : f32 to vector<4x8x16xf32>
      %c0_67 = arith.constant 0 : index
      %c0_68 = arith.constant 0 : index
      %c0_69 = arith.constant 0 : index
      %123 = vector.load %arg15[%c0_67, %c0_68, %c0_69] : memref<4x8x16xf32, #tpu.memory_space<vmem>>, vector<4x8x16xf32>
      tpu.vector_store %arg15[%c0_67, %c0_68, %c0_69], %122 {strides = array<i32>} : memref<4x8x16xf32, #tpu.memory_space<vmem>>, vector<4x8x16xf32>,
      %124 = vector.extract_strided_slice %107 {offsets = [0, 64], sizes = [8, 16], strides = [1, 1]} : vector<8x192xf32> to vector<8x16xf32>
      %125 = vector.shape_cast %124 : vector<8x16xf32> to vector<1x8x16xf32>
      %126 = vector.extract_strided_slice %107 {offsets = [0, 80], sizes = [8, 16], strides = [1, 1]} : vector<8x192xf32> to vector<8x16xf32>
      %127 = vector.shape_cast %126 : vector<8x16xf32> to vector<1x8x16xf32>
      %128 = vector.extract_strided_slice %107 {offsets = [0, 96], sizes = [8, 16], strides = [1, 1]} : vector<8x192xf32> to vector<8x16xf32>
      %129 = vector.shape_cast %128 : vector<8x16xf32> to vector<1x8x16xf32>
      %130 = vector.extract_strided_slice %107 {offsets = [0, 112], sizes = [8, 16], strides = [1, 1]} : vector<8x192xf32> to vector<8x16xf32>
      %131 = vector.shape_cast %130 : vector<8x16xf32> to vector<1x8x16xf32>
      %132 = tpu.concatenate %125, %127, %129, %131 in 0 : vector<1x8x16xf32>, vector<1x8x16xf32>, vector<1x8x16xf32>, vector<1x8x16xf32> -> vector<4x8x16xf32>
      %133 = vector.extract_strided_slice %107 {offsets = [0, 128], sizes = [8, 16], strides = [1, 1]} : vector<8x192xf32> to vector<8x16xf32>
      %134 = vector.shape_cast %133 : vector<8x16xf32> to vector<1x8x16xf32>
      %135 = vector.extract_strided_slice %107 {offsets = [0, 144], sizes = [8, 16], strides = [1, 1]} : vector<8x192xf32> to vector<8x16xf32>
      %136 = vector.shape_cast %135 : vector<8x16xf32> to vector<1x8x16xf32>
      %137 = vector.extract_strided_slice %107 {offsets = [0, 160], sizes = [8, 16], strides = [1, 1]} : vector<8x192xf32> to vector<8x16xf32>
      %138 = vector.shape_cast %137 : vector<8x16xf32> to vector<1x8x16xf32>
      %139 = vector.extract_strided_slice %107 {offsets = [0, 176], sizes = [8, 16], strides = [1, 1]} : vector<8x192xf32> to vector<8x16xf32>
      %140 = vector.shape_cast %139 : vector<8x16xf32> to vector<1x8x16xf32>
      %141 = tpu.concatenate %134, %136, %138, %140 in 0 : vector<1x8x16xf32>, vector<1x8x16xf32>, vector<1x8x16xf32>, vector<1x8x16xf32> -> vector<4x8x16xf32>
      %c0_70 = arith.constant 0 : index
      %c0_71 = arith.constant 0 : index
      %c0_72 = arith.constant 0 : index
      %142 = vector.load %arg12[%c0_70, %c0_71, %c0_72] : memref<4x8x16xf32, #tpu.memory_space<vmem>>, vector<4x8x16xf32>
      "tpu.trace_start"() <{level = 10 : i32, message = "bqd,bkd->bqk"}> : () -> ()
      %cst_73 = arith.constant dense<0.000000e+00> : vector<4x8x8xf32>
      %143 = tpu.matmul %142, %132, %cst_73 {dimension_numbers = #tpu.dot_dimension_numbers<[2], [2], [1], [1], [0, 0, 0, 1, 1, 1], [0], [0]>} : vector<4x8x16xf32>, vector<4x8x16xf32>, vector<4x8x8xf32> -> vector<4x8x8xf32>
      "tpu.trace_stop"() : () -> ()
      %c0_74 = arith.constant 0 : index
      %c0_75 = arith.constant 0 : index
      %c0_76 = arith.constant 0 : index
      %144 = vector.load %arg13[%c0_74, %c0_75, %c0_76] : memref<4x8x1xf32, #tpu.memory_space<vmem>>, vector<4x8x1xf32>
      %cst_77 = arith.constant dense<0xFF800000> : vector<4x8xf32>
      %145 = vector.multi_reduction <maximumf>, %143, %cst_77 [2] : vector<4x8x8xf32> to vector<4x8xf32>
      %146 = vector.shape_cast %145 : vector<4x8xf32> to vector<4x8x1xf32>
      %147 = arith.maximumf %144, %146 : vector<4x8x1xf32>
      %148 = arith.subf %144, %147 : vector<4x8x1xf32>
      %149 = math.exp %148 : vector<4x8x1xf32>
      %150 = vector.broadcast %147 : vector<4x8x1xf32> to vector<4x8x8xf32>
      %151 = arith.subf %143, %150 : vector<4x8x8xf32>
      %152 = math.exp %151 : vector<4x8x8xf32>
      %c0_78 = arith.constant 0 : index
      %c0_79 = arith.constant 0 : index
      %c0_80 = arith.constant 0 : index
      %153 = vector.load %arg14[%c0_78, %c0_79, %c0_80] : memref<4x8x1xf32, #tpu.memory_space<vmem>>, vector<4x8x1xf32>
      %154 = arith.mulf %149, %153 : vector<4x8x1xf32>
      %cst_81 = arith.constant dense<0.000000e+00> : vector<4x8xf32>
      %155 = vector.multi_reduction <add>, %152, %cst_81 [2] : vector<4x8x8xf32> to vector<4x8xf32>
      %156 = vector.shape_cast %155 : vector<4x8xf32> to vector<4x8x1xf32>
      %157 = arith.addf %154, %156 : vector<4x8x1xf32>
      %c0_82 = arith.constant 0 : index
      %c0_83 = arith.constant 0 : index
      %c0_84 = arith.constant 0 : index
      %158 = vector.load %arg14[%c0_82, %c0_83, %c0_84] : memref<4x8x1xf32, #tpu.memory_space<vmem>>, vector<4x8x1xf32>
      tpu.vector_store %arg14[%c0_82, %c0_83, %c0_84], %157 {strides = array<i32>} : memref<4x8x1xf32, #tpu.memory_space<vmem>>, vector<4x8x1xf32>,
      %c0_85 = arith.constant 0 : index
      %c0_86 = arith.constant 0 : index
      %c0_87 = arith.constant 0 : index
      %159 = vector.load %arg15[%c0_85, %c0_86, %c0_87] : memref<4x8x16xf32, #tpu.memory_space<vmem>>, vector<4x8x16xf32>
      %160 = vector.broadcast %149 : vector<4x8x1xf32> to vector<4x8x16xf32>
      %161 = arith.mulf %160, %159 : vector<4x8x16xf32>
      "tpu.trace_start"() <{level = 10 : i32, message = "bqk,bkd->bqd"}> : () -> ()
      %cst_88 = arith.constant dense<0.000000e+00> : vector<4x8x16xf32>
      %162 = tpu.matmul %152, %141, %cst_88 {dimension_numbers = #tpu.dot_dimension_numbers<[2], [1], [1], [2], [0, 0, 0, 1, 1, 2], [0], [0]>} : vector<4x8x8xf32>, vector<4x8x16xf32>, vector<4x8x16xf32> -> vector<4x8x16xf32>
      "tpu.trace_stop"() : () -> ()
      %163 = arith.addf %161, %162 : vector<4x8x16xf32>
      %c0_89 = arith.constant 0 : index
      %c0_90 = arith.constant 0 : index
      %c0_91 = arith.constant 0 : index
      %164 = vector.load %arg15[%c0_89, %c0_90, %c0_91] : memref<4x8x16xf32, #tpu.memory_space<vmem>>, vector<4x8x16xf32>
      tpu.vector_store %arg15[%c0_89, %c0_90, %c0_91], %163 {strides = array<i32>} : memref<4x8x16xf32, #tpu.memory_space<vmem>>, vector<4x8x16xf32>,
      %c0_92 = arith.constant 0 : index
      %c0_93 = arith.constant 0 : index
      %c0_94 = arith.constant 0 : index
      %165 = vector.load %arg13[%c0_92, %c0_93, %c0_94] : memref<4x8x1xf32, #tpu.memory_space<vmem>>, vector<4x8x1xf32>
      tpu.vector_store %arg13[%c0_92, %c0_93, %c0_94], %147 {strides = array<i32>} : memref<4x8x1xf32, #tpu.memory_space<vmem>>, vector<4x8x1xf32>,
    } else {
    }
    %c0 = arith.constant 0 : index
    %c0_1 = arith.constant 0 : index
    %c0_2 = arith.constant 0 : index
    %3 = vector.load %arg2[%c0, %c0_1, %c0_2] : memref<1x8x32xf32, #tpu.memory_space<vmem>>, vector<1x8x32xf32>
    %c0_3 = arith.constant 0 : index
    %c0_4 = arith.constant 0 : index
    %4 = vector.load %arg4[%c0_3, %c0_4] : memref<1x32xf32, #tpu.memory_space<vmem>>, vector<1x32xf32>
    %c0_5 = arith.constant 0 : index
    %c0_6 = arith.constant 0 : index
    %5 = vector.load %arg5[%c0_5, %c0_6] : memref<1x32xf32, #tpu.memory_space<vmem>>, vector<1x32xf32>
    %cst = arith.constant dense<0.000000e+00> : vector<1x8xf32>
    %6 = vector.multi_reduction <add>, %3, %cst [2] : vector<1x8x32xf32> to vector<1x8xf32>
    %7 = vector.shape_cast %6 : vector<1x8xf32> to vector<1x8x1xf32>
    %cst_7 = arith.constant 3.200000e+01 : f32
    %8 = vector.broadcast %cst_7 : f32 to vector<1x8x1xf32>
    %9 = arith.divf %7, %8 : vector<1x8x1xf32>
    %10 = vector.broadcast %9 : vector<1x8x1xf32> to vector<1x8x32xf32>
    %11 = arith.subf %3, %10 : vector<1x8x32xf32>
    %12 = arith.mulf %11, %11 : vector<1x8x32xf32>
    %cst_8 = arith.constant dense<0.000000e+00> : vector<1x8xf32>
    %13 = vector.multi_reduction <add>, %12, %cst_8 [2] : vector<1x8x32xf32> to vector<1x8xf32>
    %14 = vector.shape_cast %13 : vector<1x8xf32> to vector<1x8x1xf32>
    %cst_9 = arith.constant 3.200000e+01 : f32
    %15 = vector.broadcast %cst_9 : f32 to vector<1x8x1xf32>
    %16 = arith.divf %14, %15 : vector<1x8x1xf32>
    %17 = vector.broadcast %9 : vector<1x8x1xf32> to vector<1x8x32xf32>
    %18 = arith.subf %3, %17 : vector<1x8x32xf32>
    %cst_10 = arith.constant 9.99999974E-6 : f32
    %19 = vector.broadcast %cst_10 : f32 to vector<1x8x1xf32>
    %20 = arith.addf %16, %19 : vector<1x8x1xf32>
    %21 = math.rsqrt %20 : vector<1x8x1xf32>
    %22 = vector.broadcast %21 : vector<1x8x1xf32> to vector<1x8x32xf32>
    %23 = arith.mulf %18, %22 : vector<1x8x32xf32>
    %24 = vector.shape_cast %4 : vector<1x32xf32> to vector<1x1x32xf32>
    %25 = vector.broadcast %24 : vector<1x1x32xf32> to vector<1x8x32xf32>
    %26 = arith.mulf %23, %25 : vector<1x8x32xf32>
    %27 = vector.shape_cast %5 : vector<1x32xf32> to vector<1x1x32xf32>
    %28 = vector.broadcast %27 : vector<1x1x32xf32> to vector<1x8x32xf32>
    %29 = arith.addf %26, %28 : vector<1x8x32xf32>
    %30 = vector.shape_cast %29 : vector<1x8x32xf32> to vector<8x32xf32>
    %c0_11 = arith.constant 0 : index
    %c0_12 = arith.constant 0 : index
    %31 = vector.load %arg9[%c0_11, %c0_12] : memref<32x128xf32, #tpu.memory_space<vmem>>, vector<32x128xf32>
    %cst_13 = arith.constant dense<0.000000e+00> : vector<8x128xf32>
    %32 = tpu.matmul %30, %31, %cst_13 {dimension_numbers = #tpu.dot_dimension_numbers<[1], [0], [0], [1], [0, 0, 1, 1], [], []>} : vector<8x32xf32>, vector<32x128xf32>, vector<8x128xf32> -> vector<8x128xf32>
    %33 = vector.extract_strided_slice %32 {offsets = [0, 0], sizes = [8, 16], strides = [1, 1]} : vector<8x128xf32> to vector<8x16xf32>
    %34 = vector.shape_cast %33 : vector<8x16xf32> to vector<1x8x16xf32>
    %35 = vector.extract_strided_slice %32 {offsets = [0, 16], sizes = [8, 16], strides = [1, 1]} : vector<8x128xf32> to vector<8x16xf32>
    %36 = vector.shape_cast %35 : vector<8x16xf32> to vector<1x8x16xf32>
    %37 = vector.extract_strided_slice %32 {offsets = [0, 32], sizes = [8, 16], strides = [1, 1]} : vector<8x128xf32> to vector<8x16xf32>
    %38 = vector.shape_cast %37 : vector<8x16xf32> to vector<1x8x16xf32>
    %39 = vector.extract_strided_slice %32 {offsets = [0, 48], sizes = [8, 16], strides = [1, 1]} : vector<8x128xf32> to vector<8x16xf32>
    %40 = vector.shape_cast %39 : vector<8x16xf32> to vector<1x8x16xf32>
    %41 = tpu.concatenate %34, %36, %38, %40 in 0 : vector<1x8x16xf32>, vector<1x8x16xf32>, vector<1x8x16xf32>, vector<1x8x16xf32> -> vector<4x8x16xf32>
    %42 = vector.extract_strided_slice %32 {offsets = [0, 64], sizes = [8, 16], strides = [1, 1]} : vector<8x128xf32> to vector<8x16xf32>
    %43 = vector.shape_cast %42 : vector<8x16xf32> to vector<1x8x16xf32>
    %44 = vector.extract_strided_slice %32 {offsets = [0, 80], sizes = [8, 16], strides = [1, 1]} : vector<8x128xf32> to vector<8x16xf32>
    %45 = vector.shape_cast %44 : vector<8x16xf32> to vector<1x8x16xf32>
    %46 = vector.extract_strided_slice %32 {offsets = [0, 96], sizes = [8, 16], strides = [1, 1]} : vector<8x128xf32> to vector<8x16xf32>
    %47 = vector.shape_cast %46 : vector<8x16xf32> to vector<1x8x16xf32>
    %48 = vector.extract_strided_slice %32 {offsets = [0, 112], sizes = [8, 16], strides = [1, 1]} : vector<8x128xf32> to vector<8x16xf32>
    %49 = vector.shape_cast %48 : vector<8x16xf32> to vector<1x8x16xf32>
    %50 = tpu.concatenate %43, %45, %47, %49 in 0 : vector<1x8x16xf32>, vector<1x8x16xf32>, vector<1x8x16xf32>, vector<1x8x16xf32> -> vector<4x8x16xf32>
    %c0_14 = arith.constant 0 : index
    %c0_15 = arith.constant 0 : index
    %c0_16 = arith.constant 0 : index
    %51 = vector.load %arg12[%c0_14, %c0_15, %c0_16] : memref<4x8x16xf32, #tpu.memory_space<vmem>>, vector<4x8x16xf32>
    "tpu.trace_start"() <{level = 10 : i32, message = "bqd,bkd->bqk"}> : () -> ()
    %cst_17 = arith.constant dense<0.000000e+00> : vector<4x8x8xf32>
    %52 = tpu.matmul %51, %41, %cst_17 {dimension_numbers = #tpu.dot_dimension_numbers<[2], [2], [1], [1], [0, 0, 0, 1, 1, 1], [0], [0]>} : vector<4x8x16xf32>, vector<4x8x16xf32>, vector<4x8x8xf32> -> vector<4x8x8xf32>
    "tpu.trace_stop"() : () -> ()
    %c0_18 = arith.constant 0 : index
    %c0_19 = arith.constant 0 : index
    %c0_20 = arith.constant 0 : index
    %53 = vector.load %arg13[%c0_18, %c0_19, %c0_20] : memref<4x8x1xf32, #tpu.memory_space<vmem>>, vector<4x8x1xf32>
    %cst_21 = arith.constant dense<0xFF800000> : vector<4x8xf32>
    %54 = vector.multi_reduction <maximumf>, %52, %cst_21 [2] : vector<4x8x8xf32> to vector<4x8xf32>
    %55 = vector.shape_cast %54 : vector<4x8xf32> to vector<4x8x1xf32>
    %56 = arith.maximumf %53, %55 : vector<4x8x1xf32>
    %57 = arith.subf %53, %56 : vector<4x8x1xf32>
    %58 = math.exp %57 : vector<4x8x1xf32>
    %59 = vector.broadcast %56 : vector<4x8x1xf32> to vector<4x8x8xf32>
    %60 = arith.subf %52, %59 : vector<4x8x8xf32>
    %61 = math.exp %60 : vector<4x8x8xf32>
    %c0_22 = arith.constant 0 : index
    %c0_23 = arith.constant 0 : index
    %c0_24 = arith.constant 0 : index
    %62 = vector.load %arg14[%c0_22, %c0_23, %c0_24] : memref<4x8x1xf32, #tpu.memory_space<vmem>>, vector<4x8x1xf32>
    %63 = arith.mulf %58, %62 : vector<4x8x1xf32>
    %cst_25 = arith.constant dense<0.000000e+00> : vector<4x8xf32>
    %64 = vector.multi_reduction <add>, %61, %cst_25 [2] : vector<4x8x8xf32> to vector<4x8xf32>
    %65 = vector.shape_cast %64 : vector<4x8xf32> to vector<4x8x1xf32>
    %66 = arith.addf %63, %65 : vector<4x8x1xf32>
    %c0_26 = arith.constant 0 : index
    %c0_27 = arith.constant 0 : index
    %c0_28 = arith.constant 0 : index
    %67 = vector.load %arg14[%c0_26, %c0_27, %c0_28] : memref<4x8x1xf32, #tpu.memory_space<vmem>>, vector<4x8x1xf32>
    tpu.vector_store %arg14[%c0_26, %c0_27, %c0_28], %66 {strides = array<i32>} : memref<4x8x1xf32, #tpu.memory_space<vmem>>, vector<4x8x1xf32>,
    %c0_29 = arith.constant 0 : index
    %c0_30 = arith.constant 0 : index
    %c0_31 = arith.constant 0 : index
    %68 = vector.load %arg15[%c0_29, %c0_30, %c0_31] : memref<4x8x16xf32, #tpu.memory_space<vmem>>, vector<4x8x16xf32>
    %69 = vector.broadcast %58 : vector<4x8x1xf32> to vector<4x8x16xf32>
    %70 = arith.mulf %69, %68 : vector<4x8x16xf32>
    "tpu.trace_start"() <{level = 10 : i32, message = "bqk,bkd->bqd"}> : () -> ()
    %cst_32 = arith.constant dense<0.000000e+00> : vector<4x8x16xf32>
    %71 = tpu.matmul %61, %50, %cst_32 {dimension_numbers = #tpu.dot_dimension_numbers<[2], [1], [1], [2], [0, 0, 0, 1, 1, 2], [0], [0]>} : vector<4x8x8xf32>, vector<4x8x16xf32>, vector<4x8x16xf32> -> vector<4x8x16xf32>
    "tpu.trace_stop"() : () -> ()
    %72 = arith.addf %70, %71 : vector<4x8x16xf32>
    %c0_33 = arith.constant 0 : index
    %c0_34 = arith.constant 0 : index
    %c0_35 = arith.constant 0 : index
    %73 = vector.load %arg15[%c0_33, %c0_34, %c0_35] : memref<4x8x16xf32, #tpu.memory_space<vmem>>, vector<4x8x16xf32>
    tpu.vector_store %arg15[%c0_33, %c0_34, %c0_35], %72 {strides = array<i32>} : memref<4x8x16xf32, #tpu.memory_space<vmem>>, vector<4x8x16xf32>,
    %c0_36 = arith.constant 0 : index
    %c0_37 = arith.constant 0 : index
    %c0_38 = arith.constant 0 : index
    %74 = vector.load %arg13[%c0_36, %c0_37, %c0_38] : memref<4x8x1xf32, #tpu.memory_space<vmem>>, vector<4x8x1xf32>
    tpu.vector_store %arg13[%c0_36, %c0_37, %c0_38], %56 {strides = array<i32>} : memref<4x8x1xf32, #tpu.memory_space<vmem>>, vector<4x8x1xf32>,
    %c1_i32 = arith.constant 1 : i32
    %75 = arith.cmpi eq, %arg1, %c1_i32 : i32
    %76 = arith.extui %75 : i1 to i32
    %c0_i32_39 = arith.constant 0 : i32
    %77 = arith.cmpi ne, %76, %c0_i32_39 : i32
    scf.if %77 {
      %c0_40 = arith.constant 0 : index
      %c0_41 = arith.constant 0 : index
      %c0_42 = arith.constant 0 : index
      %78 = vector.load %arg14[%c0_40, %c0_41, %c0_42] : memref<4x8x1xf32, #tpu.memory_space<vmem>>, vector<4x8x1xf32>
      %79 = tpu.reciprocal %78 {approx = true} : vector<4x8x1xf32> -> vector<4x8x1xf32>
      %80 = arith.mulf %78, %79 : vector<4x8x1xf32>
      %cst_43 = arith.constant 2.000000e+00 : f32
      %81 = vector.broadcast %cst_43 : f32 to vector<4x8x1xf32>
      %82 = arith.subf %81, %80 : vector<4x8x1xf32>
      %83 = arith.mulf %79, %82 : vector<4x8x1xf32>
      %c0_44 = arith.constant 0 : index
      %c0_45 = arith.constant 0 : index
      %c0_46 = arith.constant 0 : index
      %84 = vector.load %arg15[%c0_44, %c0_45, %c0_46] : memref<4x8x16xf32, #tpu.memory_space<vmem>>, vector<4x8x16xf32>
      %85 = vector.broadcast %83 : vector<4x8x1xf32> to vector<4x8x16xf32>
      %86 = arith.mulf %84, %85 : vector<4x8x16xf32>
      %c0_47 = arith.constant 0 : index
      %c0_48 = arith.constant 0 : index
      %c0_49 = arith.constant 0 : index
      %87 = vector.load %arg10[%c0_47, %c0_48, %c0_49] : memref<4x16x32xf32, #tpu.memory_space<vmem>>, vector<4x16x32xf32>
      "tpu.trace_start"() <{level = 10 : i32, message = "hmd,hdD->hmD"}> : () -> ()
      %cst_50 = arith.constant dense<0.000000e+00> : vector<4x8x32xf32>
      %88 = tpu.matmul %86, %87, %cst_50 {dimension_numbers = #tpu.dot_dimension_numbers<[2], [1], [1], [2], [0, 0, 0, 1, 1, 2], [0], [0]>} : vector<4x8x16xf32>, vector<4x16x32xf32>, vector<4x8x32xf32> -> vector<4x8x32xf32>
      "tpu.trace_stop"() : () -> ()
      %cst_51 = arith.constant dense<0.000000e+00> : vector<8x32xf32>
      %89 = vector.multi_reduction <add>, %88, %cst_51 [0] : vector<4x8x32xf32> to vector<8x32xf32>
      %90 = vector.shape_cast %89 : vector<8x32xf32> to vector<1x8x32xf32>
      %c0_52 = arith.constant 0 : index
      %c0_53 = arith.constant 0 : index
      %c0_54 = arith.constant 0 : index
      %91 = vector.load %arg11[%c0_52, %c0_53, %c0_54] : memref<1x8x32xf32, #tpu.memory_space<vmem>>, vector<1x8x32xf32>
      tpu.vector_store %arg11[%c0_52, %c0_53, %c0_54], %90 {strides = array<i32>} : memref<1x8x32xf32, #tpu.memory_space<vmem>>, vector<1x8x32xf32>,
    } else {
    }
    return
  }
  func.func @transform_0(%arg0: i32, %arg1: i32) -> (i32, i32, i32) {
    %c0_i32 = arith.constant 0 : i32
    %c0_i32_0 = arith.constant 0 : i32
    return %arg0, %arg1, %c0_i32 : i32, i32, i32
  }
  func.func @transform_1(%arg0: i32, %arg1: i32) -> (i32, i32, i32) {
    %c0_i32 = arith.constant 0 : i32
    %c0_i32_0 = arith.constant 0 : i32
    %c0_i32_1 = arith.constant 0 : i32
    return %arg0, %c0_i32, %c0_i32_0 : i32, i32, i32
  }
  func.func @transform_2(%arg0: i32, %arg1: i32) -> (i32, i32) {
    %c0_i32 = arith.constant 0 : i32
    %c0_i32_0 = arith.constant 0 : i32
    %c0_i32_1 = arith.constant 0 : i32
    return %c0_i32, %c0_i32_0 : i32, i32
  }
  func.func @transform_3(%arg0: i32, %arg1: i32) -> (i32, i32) {
    %c0_i32 = arith.constant 0 : i32
    %c0_i32_0 = arith.constant 0 : i32
    %c0_i32_1 = arith.constant 0 : i32
    return %c0_i32, %c0_i32_0 : i32, i32
  }
  func.func @transform_4(%arg0: i32, %arg1: i32) -> (i32, i32) {
    %c0_i32 = arith.constant 0 : i32
    %c0_i32_0 = arith.constant 0 : i32
    %c0_i32_1 = arith.constant 0 : i32
    return %c0_i32, %c0_i32_0 : i32, i32
  }
  func.func @transform_5(%arg0: i32, %arg1: i32) -> (i32, i32) {
    %c0_i32 = arith.constant 0 : i32
    %c0_i32_0 = arith.constant 0 : i32
    %c0_i32_1 = arith.constant 0 : i32
    return %c0_i32, %c0_i32_0 : i32, i32
  }
  func.func @transform_6(%arg0: i32, %arg1: i32) -> (i32, i32) {
    %c0_i32 = arith.constant 0 : i32
    %c0_i32_0 = arith.constant 0 : i32
    %c0_i32_1 = arith.constant 0 : i32
    return %c0_i32, %c0_i32_0 : i32, i32
  }
  func.func @transform_7(%arg0: i32, %arg1: i32) -> (i32, i32) {
    %c0_i32 = arith.constant 0 : i32
    %c0_i32_0 = arith.constant 0 : i32
    %c0_i32_1 = arith.constant 0 : i32
    return %c0_i32, %c0_i32_0 : i32, i32
  }
  func.func @transform_8(%arg0: i32, %arg1: i32) -> (i32, i32, i32) {
    %c0_i32 = arith.constant 0 : i32
    %c0_i32_0 = arith.constant 0 : i32
    %c0_i32_1 = arith.constant 0 : i32
    %c0_i32_2 = arith.constant 0 : i32
    return %c0_i32, %c0_i32_0, %c0_i32_1 : i32, i32, i32
  }
  func.func @transform_9(%arg0: i32, %arg1: i32) -> (i32, i32, i32) {
    %c0_i32 = arith.constant 0 : i32
    %c0_i32_0 = arith.constant 0 : i32
    %c0_i32_1 = arith.constant 0 : i32
    return %arg0, %c0_i32, %c0_i32_0 : i32, i32, i32
  }
}

</mosaic_0001>

<bundles_post_ra>
// kernel: tpu_custom_call.1
= control target key start
LH: loop header
LB: loop body
LE: loop exit
PB: predicated region body
PF: predicated region fallthrough
CT: control target
= control target key end

     0   :  { %s2720_s0 = inlined_call_operand.hbm [shape: f32[2,16,32], index: 0, kind: input, shape index: {}]   ;;  %s2721_s1 = inlined_call_operand.hbm [shape: f32[2,8,32], index: 1, kind: input, shape index: {}]   ;;  %s2722_s2 = inlined_call_operand.vmem [shape: f32[1,32], index: 2, kind: input, shape index: {}]   ;;  %s2723_s3 = inlined_call_operand.vmem [shape: f32[1,32], index: 3, kind: input, shape index: {}]   ;;  %s2724_s4 = inlined_call_operand.vmem [shape: f32[1,32], index: 4, kind: input, shape index: {}]   ;;  %s2725_s5 = inlined_call_operand.vmem [shape: f32[1,32], index: 5, kind: input, shape index: {}]   ;;  %s2726_s6 = inlined_call_operand.hbm [shape: f32[32,192], index: 6, kind: input, shape index: {}]   ;;  %s2727_s7 = inlined_call_operand.hbm [shape: f32[32,128], index: 7, kind: input, shape index: {}]   ;;  %s2728_s8 = inlined_call_operand.hbm [shape: f32[4,16,32], index: 8, kind: input, shape index: {}]   ;;  %s2729_s9 = inlined_call_operand.hbm [shape: f32[2,8,32], index: 9, kind: output, shape index: {}]  }
   0x1   :  { %2735 = sst [smem:[#allocation27_spill]] %s2720_s0 }
   0x2   :  { %2736 = sst [smem:[#allocation28_spill]] %s2723_s3 }
   0x3   :  { %2737 = sst [smem:[#allocation29_spill]] %s2726_s6 }
   0x4   :  { %2738 = sst [smem:[#allocation30_spill]] %s2727_s7 }
   0x5   :  { %2739 = sst [smem:[#allocation31_spill]] %s2728_s8 }
   0x6   :  { %2740 = sst [smem:[#allocation32_spill]] %s2729_s9 }
   0x7   :  { %14 = vsyncpa [#allocation7], 0 }
   0x8   :  { %16 = vsyncpa [#allocation7 + $0x1], 0 }
   0x9   :  { %17 = vsyncpa [#allocation10], 0 }
   0xa   :  { %19 = vsyncpa [#allocation10 + $0x1], 0 }
   0xb   :  { %20 = vsyncpa [#allocation13], 0 }
   0xc   :  { %21 = vsyncpa [#allocation8], 0 }
   0xd   :  { %23 = vsyncpa [#allocation8 + $0x1], 0  ;;  %s2294_s30 = smov 0   ;;  %s2296_s10 = smov 0  }
   0xe   :  { %s2298_s11 = smov 0   ;;  %s2300_s12 = smov 0  }
   0xf   :  { %s2302_s13 = smov 0   ;;  %s2304_s14 = smov 0  }
  0x10   :  { %s2306_s15 = smov 0   ;;  %s2308_s16 = smov 0  }
  0x11   :  { %s2310_s17 = smov 0   ;;  %s2312_s18 = smov 0  }
  0x12   :  { %s2314_s19 = smov 0  }
  0x13 LB: > { %2741 = sst [smem:[#allocation21_spill]] %s2208_s16  ;;  %s2350_s20 = sadd.s32 4294967295, %s2220_s19   ;;  %s2220_s19 = sphi %s2314_s19, %s29_s19   ;;  %s2216_s18 = sphi %s2312_s18, %s2766_s18   ;;  %s2212_s17 = sphi %s2310_s17, %s2765_s17   ;;  %s2208_s16 = sphi %s2308_s16, %s2764_s16   ;;  %s2204_s15 = sphi %s2306_s15, %s2763_s15   ;;  %s2200_s14 = sphi %s2304_s14, %s2772_s14   ;;  %s2196_s13 = sphi %s2302_s13, %s2771_s13   ;;  %s2192_s12 = sphi %s2300_s12, %s2770_s12   ;;  %s2188_s11 = sphi %s2298_s11, %s2769_s11   ;;  %s2184_s10 = sphi %s2296_s10, %s2768_s10   ;;  %s2180_s30 = sphi %s2294_s30, %s2767_s30  }
  0x14   : > { %2742 = sst [smem:[#allocation22_spill]] %s2212_s17  ;;  %p1655_p0 = scmp.ge.s32.totalorder %s2220_s19, 1 }
  0x15   : > { %2743 = sst [smem:[#allocation23_spill]] %s2216_s18  ;;  %p64_p1 = scmp.eq.s32.totalorder %s2350_s20, 0 }
  0x16   : > { %p273_p2 = scmp.lt.s32.totalorder %s2220_s19, 5  ;;  %s2744_s6 = sld [smem:[#allocation29_spill]] }
  0x17   : > { %s2222_s25 = smov [#allocation11]   ;;  %s2747_s7 = sld [smem:[#allocation30_spill]] }
  0x18   : > { %p2358_p3 = pnand %p1655_p0, %p273_p2  ;;  %s298_s26 = sshll.u32 %s2222_s25, 4  ;;  %s299_s26 = int_to_ptr.vmem [resolvable:$true] %s298_s26 }
  0x19   : > { %s2223_s22 = smov 256   ;;  %s2225_s25 = smov [#allocation12]  }
  0x1a   : > { %p1727_p4 = pneg %p2358_p3  ;;  %s312_s9 = sshll.u32 %s2225_s25, 4  ;;  %s313_s9 = int_to_ptr.vmem [resolvable:$true] %s312_s9 }
  0x1b   : > { %s2226_s16 = smov 128   ;;  %s2227_s28 = smov 8  }
  0x1c   : > { %s296_s23 = sshll.u32 %s2744_s6, 4  ;;  %p2366_p5 = pnand %p1727_p4, %p64_p1  ;;  %s297_s23 = int_to_ptr.hbm [resolvable:$true] %s296_s23 }
  0x1d   : > { %s310_s21 = sshll.u32 %s2747_s7, 4  ;;  %s2224_s6 = smov 16   ;;  %s311_s21 = int_to_ptr.hbm [resolvable:$true] %s310_s21 }
  0x1e   : > { %1730 = dma.hbm_to_vmem [thread:$0]  (!%p2366_p5), %s297_s23, 1024, %s299_s26, [#allocation10], %s2223_s22, %s2223_s22, %s2224_s6  }
  0x1f   : > { %1733 = dma.hbm_to_vmem [thread:$0]  (!%p2366_p5), %s311_s21, 512, %s313_s9, [#allocation13], %s2226_s16, %s2226_s16, %s2227_s28  }
  0x20   : > { %s2748_s8 = sld [smem:[#allocation31_spill]]  ;;  %s2228_s6 = smov [#allocation14]  }
  0x21   : > { %s326_s23 = sshll.u32 %s2228_s6, 4  ;;  %s38_s26 = sadd.s32 1, %s2212_s17  ;;  %s327_s23 = int_to_ptr.vmem [resolvable:$true] %s326_s23 }
  0x22   : > { %p39_p6 = scmp.ge.s32.totalorder %s38_s26, 2  ;;  %s41_s9 = sadd.s32 1, %s2216_s18 }
  0x23   : > { %s50_s21 = sadd.s32 1, %s2200_s14  ;;  %p57_p7 = scmp.ne.s32.totalorder %s2200_s14, %s2196_s13 }
  0x24   : > { %s2774_s26 = smov (%p39_p6, %s38_s26), 0  ;;  %s2776_s9 = smov (!%p39_p6, %s41_s9), %s2216_s18 }
  0x25   : > { %2749 = sst [smem:[#allocation24_spill]] %s2774_s26  ;;  %s46_s7 = ssub.s32 %s2212_s17, %s2774_s26 }
  0x26   : > { %s324_s3 = sshll.u32 %s2748_s8, 4  ;;  %p58_p8 = scmp.eq.s32.totalorder %s2220_s19, 0  ;;  %s325_s3 = int_to_ptr.hbm [resolvable:$true] %s324_s3 }
  0x27   : > { %1736 = dma.hbm_to_vmem [thread:$0]  (!%p2366_p5), %s325_s3, 1024, %s327_s23, [#allocation13], %s2226_s16, %s2226_s16, %s2227_s28  }
  0x28   : > { %p43_p9 = scmp.ge.s32.totalorder %s2776_s9, 2  ;;  %p63_p10 = scmp.ne.s32.totalorder %s2196_s13, %s2192_s12 }
  0x29   : > { %p2397_p11 = por %p58_p8, %p57_p7  ;;  %p1751_p12 = scmp.lt.s32.totalorder %s2220_s19, 4 }
  0x2a   : > { %s2778_s9 = smov (%p43_p9, %s2776_s9), 0  ;;  %p2406_p13 = por %p64_p1, %p63_p10 }
  0x2b   : > { %2751 = sst [smem:[#allocation25_spill]] %s2778_s9  ;;  %s340_s27 = sand.u32 1, %s2200_s14  }
  0x2c   : > { %s45_s22 = ssub.s32 %s2216_s18, %s2778_s9  ;;  %s1660_s12 = sshll.u32 %s340_s27, 3 }
  0x2d   : > { %s47_s25 = sor.u32 %s46_s7, %s45_s22  ;;  %p74_p0 = scmp.eq.s32.totalorder %s45_s22, 0 }
  0x2e   : > { %p48_p2 = scmp.eq.s32.totalorder %s47_s25, 0  ;;  %s1661_s28 = sshll.u32 %s2216_s18, 1 }
  0x2f   : > { %s348_s6 = sadd.s32 %s2212_s17, %s1661_s28  ;;  %s344_s23 = scalar_lea.vmem [#allocation6], %s1660_s12 }
  0x30   : > { %s2415_s29 = scalar_select %p48_p2, %s2200_s14, %s50_s21  }
  0x31   : > { %s354_s8 = sshll.u32 %s344_s23, 4  ;;  %s1662_s9 = sshll.u32 %s348_s6, 3  ;;  %s355_s8 = int_to_ptr.vmem [resolvable:$true] %s354_s8 }
  0x32   : > { %2753 = sst [smem:[#allocation26_spill]] %s2415_s29  ;;  %p1738_p4 = pnand %p1751_p12, %p2397_p11 }
  0x33   : > { %s2754_s0 = sld [smem:[#allocation27_spill]]  ;;  %s341_s29 = scalar_lea.sflag [#allocation7], %s340_s27 }
  0x34   : > { %s1654_s12 = sadd.s32 4294967294, %s2220_s19   ;;  %s76_s28 = sadd.s32 1, %s2188_s11 }
  0x35   : > { %p83_p5 = scmp.ne.s32.totalorder %s2188_s11, %s2184_s10  ;;  %p89_p6 = scmp.ne.s32.totalorder %s2184_s10, %s2180_s30 }
  0x36   : > { %s2431_s6 = scalar_select %p74_p0, %s2188_s11, %s76_s28  }
  0x37   : > { %p260_p7 = scmp.eq.s32.totalorder %s2350_s20, 3  ;;  %p266_p9 = scmp.eq.s32.totalorder %s1654_s12, 3 }
  0x38   : > { %p2438_p10 = por %p83_p5, %p58_p8  ;;  %p2444_p11 = por %p89_p6, %p64_p1 }
  0x39   : > { %s350_s26 = scalar_lea.hbm %s2754_s0, %s1662_s9  ;;  %p2448_p2 = por %p260_p7, %p83_p5 }
  0x3a   : > { %s352_s21 = sshll.u32 %s350_s26, 4  ;;  %p2452_p0 = por %p266_p9, %p89_p6  ;;  %s353_s21 = int_to_ptr.hbm [resolvable:$true] %s352_s21 }
  0x3b   : > { %1740 = dma.hbm_to_vmem [thread:$0]  (!%p1738_p4), %s353_s21, 128, %s355_s8, %s341_s29  }
  0x3c   : > { %s361_s27 = sand.u32 1, %s2220_s19   ;;  %s363_s22 = sand.u32 1, %s2188_s11  }
  0x3d   : > { %s1663_s29 = sshll.u32 %s363_s22, 3  ;;  %s1664_s23 = sshll.u32 %s2216_s18, 3 }
  0x3e   : > { %s369_s21 = scalar_lea.hbm %s2721_s1, %s1664_s23  ;;  %s365_s28 = scalar_lea.vmem [#allocation9], %s1663_s29 }
  0x3f   : > { %s371_s12 = sshll.u32 %s369_s21, 4  ;;  %s373_s0 = sshll.u32 %s365_s28, 4  ;;  %s372_s12 = int_to_ptr.hbm [resolvable:$true] %s371_s12  ;;  %s374_s0 = int_to_ptr.vmem [resolvable:$true] %s373_s0 }
  0x40   : > { %p1741_p8 = pnand %p1751_p12, %p2438_p10  ;;  %s362_s17 = scalar_lea.sflag [#allocation10], %s361_s27 }
  0x41   : > { %382 = sbr.rel (%p2358_p3) target bundleno = 2564 (0xa04), region = 56  ;;  %s384_s22 = sand.u32 (!%p2358_p3), 1, %s2196_s13  }
  0x42   : > { %1743 = dma.hbm_to_vmem [thread:$0]  (!%p1741_p8), %s372_s12, 128, %s374_s0, %s362_s17  }
  0x43   : > { %s2469_s18 = sshll.u32 (!%p2358_p3), %s384_s22, 3  ;;  %s385_s23 = scalar_lea.sflag (!%p2358_p3), [#allocation7], %s384_s22 }
  0x44   : > { %s388_s7 = scalar_lea.vmem (!%p2358_p3), [#allocation6], %s2469_s18 }
  0x46   : > { %2159 = dma.done.wait (%p2406_p13), %s385_s23, 128  }
  0x47   : > { %2161 = vsyncadd (%p2406_p13), %s385_s23, 4294967168  ;;  %s394_s0 = sand.u32 1, %s2350_s20   ;;  %s396_s17 = sand.u32 1, %s2184_s10  }
  0x48   : > { %s2480_s24 = sshll.u32 %s396_s17, 3  ;;  %s395_s9 = scalar_lea.sflag [#allocation10], %s394_s0 }
  0x49   : > { %s398_s27 = scalar_lea.vmem [#allocation9], %s2480_s24 }
  0x4a   : > { %2163 = dma.done.wait (%p2444_p11), %s395_s9, 128  }
  0x4b   : > { %2165 = vsyncadd (%p2444_p11), %s395_s9, 4294967168 }
  0x4c   : > { %2167 = dma.done.wait (%p64_p1), [#allocation10], 1024  }
  0x4d   : > { %2169 = vsyncadd (%p64_p1), [#allocation10], 4294966272 }
  0x4e   : > { %2171 = dma.done.wait (%p64_p1), [#allocation13], 1536  }
  0x4f   : > { %2173 = vsyncadd (%p64_p1), [#allocation13], 4294965760  ;;  %s453_s16 = scalar_lea.vmem [#allocation15], %s2480_s24  ;;  %p1672_p3 = scmp.ne.s32.totalorder %s2204_s15, 0 }
  0x50   : > { %s2230_s21 = smov (!%p1672_p3), 80   ;;  %s2231_s12 = smov (!%p1672_p3), 112  }
  0x51   : > { %457 = sbr.rel (%p1672_p3) target bundleno = 1241 (0x4d9), region = 80  ;;  %s2232_s28 = smov (!%p1672_p3), 64  }
  0x52   : > { %s2233_s22 = smov (!%p1672_p3), 96  }
  0x56   : > { %v458_v0 = vld [vmem:[%s398_s27] sm:$0xff]  ;;  %vm461_vm0 = vcmask 261120   ;;  %v2229_v2 = vmov 32.0   ;;  %v503_v16 = vld [vmem:[#allocation11 + $0x20] sm:$0xff]  ;;  %v504_v17 = vld [vmem:[#allocation11 + $0x28] sm:$0xff]  ;;  %vm560_vm5 = vcmask 130048  }
  0x57   : > { %v462_v1 = vsel %vm461_vm0, %v458_v0, 0.0  ;;  %1871 = vrcp.f32 %v2229_v2  ;;  %v505_v14 = vld [vmem:[#allocation11 + $0x30] sm:$0xff]  ;;  %v506_v15 = vld [vmem:[#allocation11 + $0x38] sm:$0xff]  ;;  %v499_v20 = vld [vmem:[#allocation11] sm:$0xff]  ;;  %vm565_vm6 = vcmask 7168   ;;  %v2234_v44 = vmov -inf  }
  0x58   : > { %463 = vadd.xlane.f32.xlu0 %v462_v1  ;;  %522 = vmatpush.msra.mxu0 %v505_v14  ;;  %v501_v18 = vld [vmem:[#allocation11 + $0x10] sm:$0xff]  ;;  %v502_v19 = vld [vmem:[#allocation11 + $0x18] sm:$0xff]  ;;  %v500_v21 = vld [vmem:[#allocation11 + $0x8] sm:$0xff]  ;;  %566 = vst.msk [vmem:[#allocation3] sm:$0xff] %vm565_vm6, %v2234_v44  ;;  %vm704_vm7 = vcmask 64512   ;;  %v2235_v53 = vmov 0  }
  0x59   : > { %542 = vmatpush.msra.mxu1 %v506_v15  ;;  %v1869_v31 = vld [vmem:[%s2724_s4] ss:$0 sm:$0xff]  ;;  %567 = vst.msk [vmem:[#allocation3 + $0x8] sm:$0xff] %vm565_vm6, %v2234_v44  ;;  %1866 = vset.pattern.permute.xlu0 %v2235_v53  ;;  %v2236_v54 = vmov 0.0  }
  0x5a   : > { %523 = vmatpush.msra.mxu0 %v503_v16  ;;  %v1870_v34 = vld [vmem:[%s2725_s5] ss:$0 sm:$0xff]  ;;  %568 = vst.msk [vmem:[#allocation3 + $0x10] sm:$0xff] %vm565_vm6, %v2234_v44  ;;  %1868 = vset.pattern.permute.xlu2 %v2235_v53 }
  0x5b   : > { %543 = vmatpush.msra.mxu1 %v504_v17  ;;  %569 = vst.msk [vmem:[#allocation3 + $0x18] sm:$0xff] %vm565_vm6, %v2234_v44  ;;  %1867 = vset.pattern.permute.xlu1 %v2235_v53 }
  0x5c   : > { %524 = vmatpush.msra.mxu0 %v501_v18  ;;  %574 = vst.msk [vmem:[#allocation5] sm:$0xff] %vm560_vm5, %v2236_v54 }
  0x5d   : > { %v1872_v3 = vpop.eup %1871  ;;  %544 = vmatpush.msra.mxu1 %v502_v19  ;;  %570 = vst.msk [vmem:[#allocation4] sm:$0xff] %vm565_vm6, %v2236_v54 }
  0x5e   : > { %v466_v4 = vmul.f32 32.0, %v1872_v3  ;;  %vm470_vm1 = vweird.f32 %v1872_v3  ;;  %525 = vmatpush.msra.mxu0 %v499_v20  ;;  %571 = vst.msk [vmem:[#allocation4 + $0x8] sm:$0xff] %vm565_vm6, %v2236_v54 }
  0x5f   : > { %545 = vmatpush.msra.mxu1 %v500_v21  ;;  %572 = vst.msk [vmem:[#allocation4 + $0x10] sm:$0xff] %vm565_vm6, %v2236_v54  ;;  %v700_v55 = vld [vmem:[#allocation3] sm:$0xff] }
  0x60   : > { %v467_v5 = vsub.f32 1.0, %v466_v4  ;;  %573 = vst.msk [vmem:[#allocation4 + $0x18] sm:$0xff] %vm565_vm6, %v2236_v54 }
  0x61   : > { %575 = vst.msk [vmem:[#allocation5 + $0x8] sm:$0xff] %vm560_vm5, %v2236_v54 }
  0x62   : > { %v468_v6 = vmul.f32 %v1872_v3, %v467_v5  ;;  %576 = vst.msk [vmem:[#allocation5 + $0x10] sm:$0xff] %vm560_vm5, %v2236_v54  ;;  %v703_v5 = vld [vmem:[#allocation3 + $0x18] sm:$0xff] }
  0x63   : > { %577 = vst.msk [vmem:[#allocation5 + $0x18] sm:$0xff] %vm560_vm5, %v2236_v54 }
  0x64   : > { %v469_v7 = vadd.f32 %v1872_v3, %v468_v6  ;;  %v702_v6 = vld [vmem:[#allocation3 + $0x10] sm:$0xff] }
  0x66   : > { %v471_v8 = vsel %vm470_vm1, %v1872_v3, %v469_v7 }
  0x67   : > { %v768_v53 = vld [vmem:[#allocation4 + $0x18] sm:$0xff] }
  0xcb   : > { %v464_v9 = vpop.xlane.xlu0 %463 }
  0xcc   : > { %v472_v10 = vmul.f32 %v471_v8, %v464_v9 }
  0xce   : > { %v473_v11 = vsub.f32 %v458_v0, %v472_v10 }
  0xd0   : > { %v474_v12 = vmul.f32 %v473_v11, %v473_v11 }
  0xd2   : > { %v475_v13 = vsel %vm461_vm0, %v474_v12, 0.0 }
  0xd3   : > { %476 = vadd.xlane.f32.xlu0 %v475_v13 }
 0x146   : > { %v477_v22 = vpop.xlane.xlu0 %476 }
 0x147   : > { %v478_v23 = vmul.f32 %v477_v22, %v471_v8 }
 0x149   : > { %v479_v24 = vadd.f32 1e-05, %v478_v23 }
 0x14b   : > { %1873 = vrsqrt.f32 %v479_v24  ;;  %vm486_vm3 = vweird.f32 %v479_v24 }
 0x151   : > { %v1874_v25 = vpop.eup %1873 }
 0x152   : > { %v481_v26 = vmul.f32 %v1874_v25, %v479_v24  ;;  %vm487_vm2 = vweird.f32 %v1874_v25 }
 0x153   : > { %vm488_vm4 = vmor %vm486_vm3, %vm487_vm2 }
 0x154   : > { %v482_v27 = vmul.f32 %v1874_v25, %v481_v26 }
 0x156   : > { %v483_v28 = vmul.f32 0.5, %v482_v27 }
 0x158   : > { %v484_v29 = vsub.f32 1.5, %v483_v28 }
 0x15a   : > { %v485_v30 = vmul.f32 %v1874_v25, %v484_v29 }
 0x15c   : > { %v489_v32 = vsel %vm488_vm4, %v1874_v25, %v485_v30 }
 0x15d   : > { %v490_v33 = vmul.f32 %v489_v32, %v473_v11  ;;  %v701_v11 = vld [vmem:[#allocation3 + $0x8] sm:$0xff] }
 0x15f   : > { %v494_v35 = vmul.f32 %v1869_v31, %v490_v33  ;;  %v793_v33 = vld [vmem:[#allocation5] sm:$0xff] }
 0x161   : > { %v498_v36 = vadd.f32 %v1870_v34, %v494_v35 }
 0x163   : > { %1673 = vmatmul.msk.f32.vlgmr.msra.gmra.mxu0 %vm461_vm0, %v498_v36  ;;  %1674 = vmatmul.msk.f32.vlgmr.msra.gmra.mxu1 %vm461_vm0, %v498_v36 }
 0x1e0   : > { %v527_v37 = vpop.f32.mrf.mxu0  ;;  %v2507_v38 = vpop.f32.mrf.mxu1 }
 0x1e1   : > { %561 = vst.msk [vmem:[#allocation2] sm:$0xff] %vm560_vm5, %v527_v37  ;;  %839 = vmatpush.msrb.mxu0 %v2507_v38  ;;  %557 = vrot.lane.b32.xlu2 %v527_v37, %s2230_s21 }
 0x1e2   : > { %551 = vrot.lane.b32.xlu1 %v527_v37, %s2231_s12 }
 0x1e8   : > { %v588_v41 = vld [vmem:[#allocation2] sm:$0xff] }
 0x1e9   : > { %592 = vrot.lane.b32.xlu2 %v527_v37, %s2232_s28 }
 0x1ea   : > { %554 = vrot.lane.b32.xlu1 %v527_v37, %s2233_s22 }
 0x23b   : > { %v558_v39 = vpop.permute.xlu2 %557 }
 0x23c   : > { %564 = vst.msk [vmem:[#allocation2 + $0x18] sm:$0xff] %vm560_vm5, %v558_v39  ;;  %673 = vrot.lane.b32.xlu2 %v558_v39, %s2232_s28 }
 0x243   : > { %v593_v40 = vpop.permute.xlu2 %592  ;;  %v591_v52 = vld [vmem:[#allocation2 + $0x18] sm:$0xff] }
 0x244   : > { %1675 = vmatpush.xpose.msk.msra.mxu2 %vm560_vm5, %v593_v40 }
 0x247   : > { %1676 = vmatmul.msk.f32.vlgmr.msra.gmra.mxu2 %vm560_vm5, %v588_v41 }
 0x254   : > { %v552_v42 = vpop.permute.xlu1 %551 }
 0x255   : > { %562 = vst.msk [vmem:[#allocation2 + $0x8] sm:$0xff] %vm560_vm5, %v552_v42  ;;  %619 = vrot.lane.b32.xlu0 %v552_v42, %s2232_s28 }
 0x25c   : > { %v555_v43 = vpop.permute.xlu1 %554  ;;  %v589_v48 = vld [vmem:[#allocation2 + $0x8] sm:$0xff] }
 0x25d   : > { %563 = vst.msk [vmem:[#allocation2 + $0x10] sm:$0xff] %vm560_vm5, %v555_v43  ;;  %646 = vrot.lane.b32.xlu1 %v555_v43, %s2232_s28 }
 0x264   : > { %v590_v51 = vld [vmem:[#allocation2 + $0x10] sm:$0xff] }
 0x296   : > { %v674_v46 = vpop.permute.xlu2 %673 }
 0x2c7   : > { %v620_v45 = vpop.permute.xlu0 %619 }
 0x2c8   : > { %1677 = vmatpush.xpose.msk.msra.mxu3 %vm560_vm5, %v620_v45 }
 0x2ca   : > { %v616_v47 = vpop.f32.mrf.mxu2 }
 0x2cb   : > { %1678 = vmatmul.msk.f32.vlgmr.msra.gmra.mxu3 %vm560_vm5, %v589_v48  ;;  %v705_v49 = vsel %vm704_vm7, %v616_v47, -inf }
 0x2cc   : > { %1681 = vmatpush.xpose.msk.msrb.mxu3 %vm560_vm5, %v674_v46  ;;  %706 = vmax.xlane.f32.xlu0 %v705_v49  ;;  %v765_v49 = vld [vmem:[#allocation4] sm:$0xff] }
 0x2cf   : > { %v647_v50 = vpop.permute.xlu1 %646 }
 0x2d0   : > { %1679 = vmatpush.xpose.msk.msrb.mxu2 %vm560_vm5, %v647_v50 }
 0x2d3   : > { %1680 = vmatmul.msk.f32.vlgmr.msrb.gmra.mxu2 %vm560_vm5, %v590_v51  ;;  %1682 = vmatmul.msk.f32.vlgmr.msrb.gmra.mxu3 %vm560_vm5, %v591_v52 }
 0x33f   : > { %v707_v56 = vpop.xlane.xlu0 %706 }
 0x340   : > { %v717_v57 = vmax.f32 %v700_v55, %v707_v56 }
 0x342   : > { %v721_v58 = vsub.f32 %v700_v55, %v717_v57  ;;  %921 = vst.msk [vmem:[#allocation3] sm:$0xff] %vm565_vm6, %v717_v57  ;;  %735 = vperm.xlu0 %1866, %v717_v57  }
 0x344   : > { %v725_v17 = vmul.f32 1.442695, %v721_v58 }
 0x34e   : > { %v2539_v59 = vpop.f32.mrf.mxu3 }
 0x34f   : > { %v708_v0 = vsel %vm704_vm7, %v2539_v59, -inf }
 0x356   : > { %v2541_v60 = vpop.f32.mrf.mxu2  ;;  %v697_v61 = vpop.f32.mrf.mxu3 }
 0x357   : > { %v714_v62 = vsel %vm704_vm7, %v697_v61, -inf  ;;  %v711_v63 = vsel %vm704_vm7, %v2541_v60, -inf }
 0x358   : > { %715 = vmax.xlane.f32.xlu2 %v714_v62  ;;  %712 = vmax.xlane.f32.xlu1 %v711_v63 }
 0x360   : > { %709 = vmax.xlane.f32.xlu2 %v708_v0  ;;  %v766_v0 = vld [vmem:[#allocation4 + $0x8] sm:$0xff] }
 0x3b4   : > { %v736_v1 = vpop.permute.xlu0 %735 }
 0x3b5   : > { %v753_v2 = vsub.f32 %v616_v47, %v736_v1 }
 0x3b7   : > { %v757_v3 = vmul.f32 1.442695, %v753_v2 }
 0x3b9   : > { %1875 = vpow2.f32 %v757_v3 }
 0x3bf   : > { %v1876_v4 = vpop.eup %1875 }
 0x3c0   : > { %1683 = vmatmul.msk.f32.vlgmr.msrb.gmra.mxu0 %vm704_vm7, %v1876_v4  ;;  %v773_v25 = vsel %vm704_vm7, %v1876_v4, 0.0  ;;  %v795_v4 = vld [vmem:[#allocation5 + $0x10] sm:$0xff] }
 0x3cb   : > { %v716_v7 = vpop.xlane.xlu2 %715  ;;  %v713_v8 = vpop.xlane.xlu1 %712 }
 0x3cc   : > { %v720_v9 = vmax.f32 %v703_v5, %v716_v7  ;;  %v719_v10 = vmax.f32 %v702_v6, %v713_v8 }
 0x3ce   : > { %924 = vst.msk [vmem:[#allocation3 + $0x18] sm:$0xff] %vm565_vm6, %v720_v9  ;;  %750 = vperm.xlu2 %1868, %v720_v9   ;;  %745 = vperm.xlu1 %1867, %v719_v10   ;;  %v724_v16 = vsub.f32 %v703_v5, %v720_v9  ;;  %v723_v19 = vsub.f32 %v702_v6, %v719_v10  ;;  %v794_v5 = vld [vmem:[#allocation5 + $0x8] sm:$0xff] }
 0x3cf   : > { %923 = vst.msk [vmem:[#allocation3 + $0x10] sm:$0xff] %vm565_vm6, %v719_v10  ;;  %v796_v10 = vld [vmem:[#allocation5 + $0x18] sm:$0xff] }
 0x3d0   : > { %v731_v18 = vmul.f32 1.442695, %v724_v16  ;;  %v729_v21 = vmul.f32 1.442695, %v723_v19 }
 0x3d3   : > { %v710_v12 = vpop.xlane.xlu2 %709 }
 0x3d4   : > { %v718_v13 = vmax.f32 %v701_v11, %v710_v12 }
 0x3d6   : > { %v722_v14 = vsub.f32 %v701_v11, %v718_v13  ;;  %922 = vst.msk [vmem:[#allocation3 + $0x8] sm:$0xff] %vm565_vm6, %v718_v13  ;;  %582 = vrot.lane.b32.xlu2 %v2507_v38, %s2233_s22  ;;  %740 = vperm.xlu1 %1867, %v718_v13  }
 0x3d8   : > { %v727_v15 = vmul.f32 1.442695, %v722_v14 }
 0x3da   : > { %1877 = vpow2.f32 %v727_v15 }
 0x3db   : > { %1879 = vpow2.f32 %v725_v17 }
 0x3dc   : > { %1881 = vpow2.f32 %v731_v18 }
 0x3dd   : > { %1883 = vpow2.f32 %v729_v21 }
 0x3de   : > { %579 = vrot.lane.b32.xlu2 %v2507_v38, %s2231_s12  ;;  %585 = vrot.lane.b32.xlu1 %v2507_v38, %s2230_s21 }
 0x3e0   : > { %v2558_v20 = vpop.eup %1877 }
 0x3e1   : > { %804 = vperm.xlu0 %1866, %v2558_v20   ;;  %v1880_v22 = vpop.eup %1879  ;;  %v770_v1 = vmul.f32 %v2558_v20, %v766_v0 }
 0x3e2   : > { %v1882_v23 = vpop.eup %1881  ;;  %v769_v50 = vmul.f32 %v1880_v22, %v765_v49 }
 0x3e3   : > { %v1884_v24 = vpop.eup %1883  ;;  %v772_v54 = vmul.f32 %v1882_v23, %v768_v53 }
 0x3e6   : > { %799 = vperm.xlu2 %1868, %v1880_v22  }
 0x3e9   : > { %814 = vperm.xlu0 %1866, %v1882_v23  }
 0x3ee   : > { %809 = vperm.xlu2 %1868, %v1884_v24  }
 0x408   : > { %774 = vadd.xlane.f32.xlu1 %v773_v25 }
 0x428   : > { %v751_v26 = vpop.permute.xlu2 %750 }
 0x429   : > { %v756_v27 = vsub.f32 %v697_v61, %v751_v26 }
 0x42b   : > { %v763_v28 = vmul.f32 1.442695, %v756_v27 }
 0x42d   : > { %1885 = vpow2.f32 %v763_v28 }
 0x430   : > { %v583_v29 = vpop.permute.xlu2 %582 }
 0x431   : > { %885 = vmatpush.msra.mxu2 %v583_v29 }
 0x433   : > { %v1886_v30 = vpop.eup %1885 }
 0x434   : > { %v782_v31 = vsel %vm704_vm7, %v1886_v30, 0.0 }
 0x435   : > { %783 = vadd.xlane.f32.xlu1 %v782_v31 }
 0x438   : > { %v580_v32 = vpop.permute.xlu2 %579 }
 0x439   : > { %862 = vmatpush.msrb.mxu1 %v580_v32 }
 0x43d   : > { %v841_v38 = vpop.f32.mrf.mxu0 }
 0x440   : > { %v800_v34 = vpop.permute.xlu2 %799  ;;  %v746_v35 = vpop.permute.xlu1 %745 }
 0x441   : > { %v817_v36 = vmul.f32 %v800_v34, %v793_v33  ;;  %v755_v37 = vsub.f32 %v2541_v60, %v746_v35 }
 0x443   : > { %v913_v39 = vadd.f32 %v841_v38, %v817_v36  ;;  %v761_v40 = vmul.f32 1.442695, %v755_v37 }
 0x445   : > { %917 = vst.msk [vmem:[#allocation5] sm:$0xff] %vm560_vm5, %v913_v39  ;;  %1887 = vpow2.f32 %v761_v40 }
 0x448   : > { %v741_v41 = vpop.permute.xlu1 %740  ;;  %v810_v61 = vpop.permute.xlu2 %809 }
 0x449   : > { %v754_v42 = vsub.f32 %v2539_v59, %v741_v41  ;;  %v767_v59 = vld [vmem:[#allocation4 + $0x10] sm:$0xff]  ;;  %v819_v6 = vmul.f32 %v810_v61, %v795_v4 }
 0x44a   : > { %v771_v60 = vmul.f32 %v1884_v24, %v767_v59 }
 0x44b   : > { %v1888_v43 = vpop.eup %1887  ;;  %v759_v44 = vmul.f32 1.442695, %v754_v42 }
 0x44c   : > { %1685 = vmatmul.msk.f32.vlgmr.msra.gmra.mxu2 %vm704_vm7, %v1888_v43  ;;  %v779_v45 = vsel %vm704_vm7, %v1888_v43, 0.0 }
 0x44d   : > { %1889 = vpow2.f32 %v759_v44  ;;  %780 = vadd.xlane.f32.xlu0 %v779_v45 }
 0x450   : > { %v586_v46 = vpop.permute.xlu1 %585 }
 0x451   : > { %908 = vmatpush.msra.mxu3 %v586_v46 }
 0x452   : > { %1686 = vmatmul.msk.f32.vlgmr.msra.gmra.mxu3 %vm704_vm7, %v1886_v30 }
 0x453   : > { %v1890_v47 = vpop.eup %1889  ;;  %v805_v57 = vpop.permute.xlu0 %804 }
 0x454   : > { %1684 = vmatmul.msk.f32.vlgmr.msrb.gmra.mxu1 %vm704_vm7, %v1890_v47  ;;  %v776_v48 = vsel %vm704_vm7, %v1890_v47, 0.0  ;;  %v818_v8 = vmul.f32 %v805_v57, %v794_v5 }
 0x455   : > { %777 = vadd.xlane.f32.xlu2 %v776_v48 }
 0x45b   : > { %v815_v58 = vpop.permute.xlu0 %814 }
 0x45c   : > { %v820_v13 = vmul.f32 %v815_v58, %v796_v10 }
 0x47b   : > { %v775_v51 = vpop.xlane.xlu1 %774 }
 0x47c   : > { %v785_v52 = vadd.f32 %v775_v51, %v769_v50 }
 0x47e   : > { %789 = vst.msk [vmem:[#allocation4] sm:$0xff] %vm565_vm6, %v785_v52 }
 0x4a8   : > { %v784_v55 = vpop.xlane.xlu1 %783 }
 0x4a9   : > { %v788_v56 = vadd.f32 %v784_v55, %v772_v54 }
 0x4ab   : > { %792 = vst.msk [vmem:[#allocation4 + $0x18] sm:$0xff] %vm565_vm6, %v788_v56 }
 0x4c0   : > { %v781_v62 = vpop.xlane.xlu0 %780 }
 0x4c1   : > { %v787_v63 = vadd.f32 %v781_v62, %v771_v60 }
 0x4c3   : > { %791 = vst.msk [vmem:[#allocation4 + $0x10] sm:$0xff] %vm565_vm6, %v787_v63 }
 0x4c8   : > { %v778_v2 = vpop.xlane.xlu2 %777 }
 0x4c9   : > { %v786_v3 = vadd.f32 %v778_v2, %v770_v1 }
 0x4cb   : > { %790 = vst.msk [vmem:[#allocation4 + $0x8] sm:$0xff] %vm565_vm6, %v786_v3 }
 0x4cf   : > { %v887_v7 = vpop.f32.mrf.mxu2 }
 0x4d0   : > { %v915_v9 = vadd.f32 %v887_v7, %v819_v6 }
 0x4d1   : > { %v864_v11 = vpop.f32.mrf.mxu1 }
 0x4d2   : > { %919 = vst.msk [vmem:[#allocation5 + $0x10] sm:$0xff] %vm560_vm5, %v915_v9  ;;  %v914_v12 = vadd.f32 %v864_v11, %v818_v8 }
 0x4d4   : > { %918 = vst.msk [vmem:[#allocation5 + $0x8] sm:$0xff] %vm560_vm5, %v914_v12 }
 0x4d5   : > { %v910_v14 = vpop.f32.mrf.mxu3 }
 0x4d6   : > { %v916_v15 = vadd.f32 %v910_v14, %v820_v13 }
 0x4d8   : > { %920 = vst.msk [vmem:[#allocation5 + $0x18] sm:$0xff] %vm560_vm5, %v916_v15 }
 0x4d9 PF: > { %v925_v16 = vld [vmem:[%s388_s7] sm:$0xff]  ;;  %vm928_vm8 = vcmask 261120   ;;  %v2237_v18 = vmov 32.0   ;;  %v969_v30 = vld [vmem:[#allocation12 + $0x18] sm:$0xff]  ;;  %v968_v31 = vld [vmem:[#allocation12 + $0x10] sm:$0xff]  ;;  %s2759_s9 = sld [smem:[#allocation28_spill]] }
 0x4da   : > { %v929_v17 = vsel %vm928_vm8, %v925_v16, 0.0  ;;  %1906 = vrcp.f32 %v2237_v18  ;;  %985 = vmatpush.msra.mxu0 %v969_v30  ;;  %v967_v32 = vld [vmem:[#allocation12 + $0x8] sm:$0xff]  ;;  %v966_v33 = vld [vmem:[#allocation12] sm:$0xff]  ;;  %vm1004_vm13 = vcmask 130048   ;;  %s2238_s27 = smov 80   ;;  %s2239_s20 = smov 112  }
 0x4db   : > { %930 = vadd.xlane.f32.xlu0 %v929_v17  ;;  %v1904_v43 = vld [vmem:[%s2722_s2] ss:$0 sm:$0xff]  ;;  %s2240_s26 = smov 96   ;;  %v1003_v52 = vld [vmem:[#allocation2 + $0x18] sm:$0xff]  ;;  %v1001_v54 = vld [vmem:[#allocation2 + $0x8] sm:$0xff]  ;;  %vm1109_vm14 = vcmask 64512  }
 0x4dc   : > { %986 = vmatpush.msra.mxu0 %v968_v31  ;;  %v1000_v50 = vld [vmem:[#allocation2] sm:$0xff]  ;;  %v1002_v56 = vld [vmem:[#allocation2 + $0x10] sm:$0xff]  ;;  %v2241_v61 = vmov 0   ;;  %vm1194_vm15 = vcmask 7168   ;;  %v1108_v6 = vld [vmem:[#allocation3 + $0x18] sm:$0xff]  ;;  %s2242_s29 = smov 64  }
 0x4dd   : > { %1891 = vset.pattern.permute.xlu0 %v2241_v61  ;;  %1892 = vset.pattern.permute.xlu2 %v2241_v61  ;;  %v1105_v62 = vld [vmem:[#allocation3] sm:$0xff]  ;;  %v1106_v13 = vld [vmem:[#allocation3 + $0x8] sm:$0xff]  ;;  %v1107_v18 = vld [vmem:[#allocation3 + $0x10] sm:$0xff]  ;;  %p1700_p1 = scmp.ne.s32.totalorder %s2204_s15, 1 }
 0x4de   : > { %987 = vmatpush.msra.mxu0 %v967_v32  ;;  %1893 = vset.pattern.permute.xlu1 %v2241_v61 }
 0x4df   : > { %v1905_v46 = vld [vmem:[%s2759_s9] ss:$0 sm:$0xff] }
 0x4e0   : > { %v1907_v19 = vpop.eup %1906  ;;  %988 = vmatpush.msra.mxu0 %v966_v33 }
 0x4e1   : > { %v933_v20 = vmul.f32 32.0, %v1907_v19  ;;  %vm937_vm9 = vweird.f32 %v1907_v19 }
 0x4e3   : > { %v934_v21 = vsub.f32 1.0, %v933_v20 }
 0x4e5   : > { %v935_v22 = vmul.f32 %v1907_v19, %v934_v21 }
 0x4e7   : > { %v936_v23 = vadd.f32 %v1907_v19, %v935_v22 }
 0x4e9   : > { %v938_v24 = vsel %vm937_vm9, %v1907_v19, %v936_v23 }
 0x54e   : > { %v931_v25 = vpop.xlane.xlu0 %930 }
 0x54f   : > { %v939_v26 = vmul.f32 %v938_v24, %v931_v25 }
 0x551   : > { %v940_v27 = vsub.f32 %v925_v16, %v939_v26 }
 0x553   : > { %v941_v28 = vmul.f32 %v940_v27, %v940_v27 }
 0x555   : > { %v942_v29 = vsel %vm928_vm8, %v941_v28, 0.0 }
 0x556   : > { %943 = vadd.xlane.f32.xlu0 %v942_v29 }
 0x5c9   : > { %v944_v34 = vpop.xlane.xlu0 %943 }
 0x5ca   : > { %v945_v35 = vmul.f32 %v944_v34, %v938_v24 }
 0x5cc   : > { %v946_v36 = vadd.f32 1e-05, %v945_v35 }
 0x5ce   : > { %1908 = vrsqrt.f32 %v946_v36  ;;  %vm953_vm11 = vweird.f32 %v946_v36 }
 0x5d4   : > { %v1909_v37 = vpop.eup %1908 }
 0x5d5   : > { %v948_v38 = vmul.f32 %v1909_v37, %v946_v36  ;;  %vm954_vm10 = vweird.f32 %v1909_v37 }
 0x5d6   : > { %vm955_vm12 = vmor %vm953_vm11, %vm954_vm10 }
 0x5d7   : > { %v949_v39 = vmul.f32 %v1909_v37, %v948_v38 }
 0x5d9   : > { %v950_v40 = vmul.f32 0.5, %v949_v39 }
 0x5db   : > { %v951_v41 = vsub.f32 1.5, %v950_v40 }
 0x5dd   : > { %v952_v42 = vmul.f32 %v1909_v37, %v951_v41 }
 0x5df   : > { %v956_v44 = vsel %vm955_vm12, %v1909_v37, %v952_v42 }
 0x5e0   : > { %v957_v45 = vmul.f32 %v956_v44, %v940_v27 }
 0x5e2   : > { %v961_v47 = vmul.f32 %v1904_v43, %v957_v45 }
 0x5e4   : > { %v965_v48 = vadd.f32 %v1905_v46, %v961_v47 }
 0x5e6   : > { %1687 = vmatmul.msk.f32.vlgmr.msra.gmra.mxu0 %vm928_vm8, %v965_v48 }
 0x663   : > { %v2590_v49 = vpop.f32.mrf.mxu0 }
 0x664   : > { %998 = vrot.lane.b32.xlu2 %v2590_v49, %s2238_s27  ;;  %994 = vrot.lane.b32.xlu1 %v2590_v49, %s2239_s20 }
 0x665   : > { %1688 = vmatpush.xpose.msk.msra.mxu1 %vm1004_vm13, %v2590_v49 }
 0x668   : > { %1689 = vmatmul.msk.f32.vlgmr.msra.gmra.mxu1 %vm1004_vm13, %v1000_v50 }
 0x66c   : > { %996 = vrot.lane.b32.xlu1 %v2590_v49, %s2240_s26 }
 0x6be   : > { %v999_v51 = vpop.permute.xlu2 %998 }
 0x6bf   : > { %1694 = vmatpush.xpose.msk.msrb.mxu1 %vm1004_vm13, %v999_v51 }
 0x6c2   : > { %1695 = vmatmul.msk.f32.vlgmr.msrb.gmra.mxu1 %vm1004_vm13, %v1003_v52 }
 0x6d6   : > { %v995_v53 = vpop.permute.xlu1 %994 }
 0x6d7   : > { %1690 = vmatpush.xpose.msk.msra.mxu2 %vm1004_vm13, %v995_v53  ;;  %v1894_v21 = vpack.i.bf16 %v995_v53, %v2590_v49 }
 0x6da   : > { %1691 = vmatmul.msk.f32.vlgmr.msra.gmra.mxu2 %vm1004_vm13, %v1001_v54  ;;  %v1170_v54 = vld [vmem:[#allocation4] sm:$0xff] }
 0x6de   : > { %v997_v55 = vpop.permute.xlu1 %996 }
 0x6df   : > { %1692 = vmatpush.xpose.msk.msra.mxu3 %vm1004_vm13, %v997_v55  ;;  %v1899_v11 = vpack.i.bf16 %v999_v51, %v997_v55 }
 0x6e2   : > { %1693 = vmatmul.msk.f32.vlgmr.msra.gmra.mxu3 %vm1004_vm13, %v1002_v56 }
 0x6e5   : > { %v2604_v57 = vpop.f32.mrf.mxu1 }
 0x6e6   : > { %v1110_v58 = vsel %vm1109_vm14, %v2604_v57, -inf }
 0x6e7   : > { %1111 = vmax.xlane.f32.xlu2 %v1110_v58 }
 0x73f   : > { %v2608_v59 = vpop.f32.mrf.mxu1 }
 0x740   : > { %v1119_v60 = vsel %vm1109_vm14, %v2608_v59, -inf }
 0x741   : > { %1120 = vmax.xlane.f32.xlu0 %v1119_v60 }
 0x75a   : > { %v1112_v63 = vpop.xlane.xlu2 %1111 }
 0x75b   : > { %v1122_v0 = vmax.f32 %v1105_v62, %v1112_v63 }
 0x75d   : > { %v1052_v1 = vpop.f32.mrf.mxu2  ;;  %v1126_v2 = vsub.f32 %v1105_v62, %v1122_v0  ;;  %1339 = vst.msk [vmem:[#allocation3] sm:$0xff] %vm1194_vm15, %v1122_v0 }
 0x75e   : > { %v1113_v3 = vsel %vm1109_vm14, %v1052_v1, -inf }
 0x75f   : > { %1114 = vmax.xlane.f32.xlu0 %v1113_v3  ;;  %v1130_v19 = vmul.f32 1.442695, %v1126_v2 }
 0x765   : > { %v2614_v4 = vpop.f32.mrf.mxu3 }
 0x766   : > { %v1116_v5 = vsel %vm1109_vm14, %v2614_v4, -inf }
 0x767   : > { %1117 = vmax.xlane.f32.xlu1 %v1116_v5 }
 0x773   : > { %1140 = vperm.xlu0 %1891, %v1122_v0   ;;  %v1171_v0 = vld [vmem:[#allocation4 + $0x8] sm:$0xff] }
 0x7b4   : > { %v1121_v7 = vpop.xlane.xlu0 %1120 }
 0x7b5   : > { %v1125_v8 = vmax.f32 %v1108_v6, %v1121_v7 }
 0x7b7   : > { %v1129_v9 = vsub.f32 %v1108_v6, %v1125_v8  ;;  %1342 = vst.msk [vmem:[#allocation3 + $0x18] sm:$0xff] %vm1194_vm15, %v1125_v8  ;;  %1155 = vperm.xlu0 %1891, %v1125_v8  }
 0x7b9   : > { %v1136_v10 = vmul.f32 1.442695, %v1129_v9  ;;  %v1200_v9 = vld [vmem:[#allocation5 + $0x8] sm:$0xff] }
 0x7bb   : > { %1910 = vpow2.f32 %v1136_v10 }
 0x7bf   : > { %1900 = vrot.lane.b32.xlu0 %v1899_v11, %s2242_s29  ;;  %v1199_v11 = vld [vmem:[#allocation5] sm:$0xff] }
 0x7c1   : > { %v2619_v12 = vpop.eup %1910 }
 0x7c7   : > { %1220 = vperm.xlu0 %1891, %v2619_v12  }
 0x7d2   : > { %v1115_v14 = vpop.xlane.xlu0 %1114 }
 0x7d3   : > { %v1123_v15 = vmax.f32 %v1106_v13, %v1115_v14 }
 0x7d5   : > { %v1127_v16 = vsub.f32 %v1106_v13, %v1123_v15  ;;  %1340 = vst.msk [vmem:[#allocation3 + $0x8] sm:$0xff] %vm1194_vm15, %v1123_v15  ;;  %1145 = vperm.xlu2 %1892, %v1123_v15  }
 0x7d7   : > { %v1132_v17 = vmul.f32 1.442695, %v1127_v16 }
 0x7d9   : > { %1912 = vpow2.f32 %v1132_v17 }
 0x7da   : > { %v1118_v20 = vpop.xlane.xlu1 %1117  ;;  %1914 = vpow2.f32 %v1130_v19 }
 0x7db   : > { %v1124_v22 = vmax.f32 %v1107_v18, %v1118_v20 }
 0x7dd   : > { %1341 = vst.msk [vmem:[#allocation3 + $0x10] sm:$0xff] %vm1194_vm15, %v1124_v22  ;;  %1150 = vperm.xlu1 %1893, %v1124_v22   ;;  %1895 = vrot.lane.b32.xlu2 %v1894_v21, %s2242_s29  ;;  %v1128_v23 = vsub.f32 %v1107_v18, %v1124_v22  ;;  %v1172_v18 = vld [vmem:[#allocation4 + $0x10] sm:$0xff] }
 0x7de   : > { %v1201_v22 = vld [vmem:[#allocation5 + $0x10] sm:$0xff] }
 0x7df   : > { %v2625_v24 = vpop.eup %1912  ;;  %v1134_v25 = vmul.f32 1.442695, %v1128_v23 }
 0x7e0   : > { %1210 = vperm.xlu0 %1891, %v2625_v24   ;;  %v1915_v26 = vpop.eup %1914  ;;  %v1175_v3 = vmul.f32 %v2625_v24, %v1171_v0 }
 0x7e1   : > { %1916 = vpow2.f32 %v1134_v25  ;;  %v1174_v55 = vmul.f32 %v1915_v26, %v1170_v54 }
 0x7e5   : > { %1205 = vperm.xlu1 %1893, %v1915_v26   ;;  %v1141_v28 = vpop.permute.xlu0 %1140 }
 0x7e6   : > { %v1158_v29 = vsub.f32 %v2604_v57, %v1141_v28 }
 0x7e7   : > { %v2628_v27 = vpop.eup %1916 }
 0x7e8   : > { %v1162_v30 = vmul.f32 1.442695, %v1158_v29  ;;  %v1176_v19 = vmul.f32 %v2628_v27, %v1172_v18 }
 0x7ea   : > { %1918 = vpow2.f32 %v1162_v30 }
 0x7ed   : > { %1215 = vperm.xlu1 %1893, %v2628_v27  }
 0x7f0   : > { %v1919_v31 = vpop.eup %1918 }
 0x7f1   : > { %v1178_v32 = vsel %vm1109_vm14, %v1919_v31, 0.0 }
 0x806   : > { %1179 = vadd.xlane.f32.xlu2 %v1178_v32 }
 0x829   : > { %v1156_v33 = vpop.permute.xlu0 %1155 }
 0x82a   : > { %v1161_v34 = vsub.f32 %v2608_v59, %v1156_v33  ;;  %v1173_v59 = vld [vmem:[#allocation4 + $0x18] sm:$0xff] }
 0x82b   : > { %v1177_v61 = vmul.f32 %v2619_v12, %v1173_v59 }
 0x82c   : > { %v1168_v35 = vmul.f32 1.442695, %v1161_v34 }
 0x82e   : > { %1920 = vpow2.f32 %v1168_v35 }
 0x82f   : > { %v1146_v36 = vpop.permute.xlu2 %1145 }
 0x830   : > { %v1159_v37 = vsub.f32 %v1052_v1, %v1146_v36  ;;  %v1202_v1 = vld [vmem:[#allocation5 + $0x18] sm:$0xff] }
 0x831   : > { %v1901_v38 = vpop.permute.xlu0 %1900 }
 0x832   : > { %v1164_v39 = vmul.f32 1.442695, %v1159_v37  ;;  %v1903_v40 = vunpack.i.h.bf16 %v1901_v38  ;;  %v1902_v41 = vunpack.i.l.bf16 %v1901_v38 }
 0x834   : > { %v1921_v42 = vpop.eup %1920  ;;  %1922 = vpow2.f32 %v1164_v39  ;;  %1300 = vmatpush.msrb.mxu0 %v1902_v41  ;;  %1326 = vmatpush.msra.mxu1 %v1903_v40 }
 0x835   : > { %1699 = vmatmul.msk.f32.vlgmr.msra.gmra.mxu1 %vm1109_vm14, %v1921_v42  ;;  %v1187_v43 = vsel %vm1109_vm14, %v1921_v42, 0.0 }
 0x836   : > { %1188 = vadd.xlane.f32.xlu2 %v1187_v43 }
 0x837   : > { %v1896_v44 = vpop.permute.xlu2 %1895 }
 0x838   : > { %v1897_v45 = vunpack.i.l.bf16 %v1896_v44  ;;  %v1898_v46 = vunpack.i.h.bf16 %v1896_v44 }
 0x839   : > { %v1221_v2 = vpop.permute.xlu0 %1220 }
 0x83a   : > { %v1923_v47 = vpop.eup %1922  ;;  %1248 = vmatpush.msrb.mxu2 %v1897_v45  ;;  %1274 = vmatpush.msrb.mxu3 %v1898_v46  ;;  %v1226_v6 = vmul.f32 %v1221_v2, %v1202_v1 }
 0x83b   : > { %1696 = vmatmul.msk.f32.vlgmr.msrb.gmra.mxu2 %vm1109_vm14, %v1919_v31  ;;  %1697 = vmatmul.msk.f32.vlgmr.msrb.gmra.mxu3 %vm1109_vm14, %v1923_v47  ;;  %v1181_v48 = vsel %vm1109_vm14, %v1923_v47, 0.0 }
 0x83c   : > { %1182 = vadd.xlane.f32.xlu1 %v1181_v48 }
 0x84f   : > { %v1151_v49 = vpop.permute.xlu1 %1150 }
 0x850   : > { %v1160_v50 = vsub.f32 %v2614_v4, %v1151_v49 }
 0x852   : > { %v1166_v51 = vmul.f32 1.442695, %v1160_v50  ;;  %v1211_v10 = vpop.permute.xlu0 %1210 }
 0x853   : > { %v1224_v12 = vmul.f32 %v1211_v10, %v1200_v9 }
 0x854   : > { %1924 = vpow2.f32 %v1166_v51 }
 0x857   : > { %v1206_v58 = vpop.permute.xlu1 %1205 }
 0x858   : > { %v1223_v13 = vmul.f32 %v1206_v58, %v1199_v11 }
 0x85a   : > { %v1925_v52 = vpop.eup %1924 }
 0x85b   : > { %1698 = vmatmul.msk.f32.vlgmr.msrb.gmra.mxu0 %vm1109_vm14, %v1925_v52  ;;  %v1184_v53 = vsel %vm1109_vm14, %v1925_v52, 0.0 }
 0x85c   : > { %1185 = vadd.xlane.f32.xlu0 %v1184_v53 }
 0x85f   : > { %v1216_v60 = vpop.permute.xlu1 %1215 }
 0x860   : > { %v1225_v23 = vmul.f32 %v1216_v60, %v1201_v22 }
 0x879   : > { %v1180_v56 = vpop.xlane.xlu2 %1179 }
 0x87a   : > { %v1190_v57 = vadd.f32 %v1180_v56, %v1174_v55 }
 0x87c   : > { %1195 = vst.msk [vmem:[#allocation4] sm:$0xff] %vm1194_vm15, %v1190_v57 }
 0x8a9   : > { %v1189_v62 = vpop.xlane.xlu2 %1188 }
 0x8aa   : > { %v1193_v63 = vadd.f32 %v1189_v62, %v1177_v61 }
 0x8ac   : > { %1198 = vst.msk [vmem:[#allocation4 + $0x18] sm:$0xff] %vm1194_vm15, %v1193_v63 }
 0x8af   : > { %v1183_v4 = vpop.xlane.xlu1 %1182 }
 0x8b0   : > { %v1191_v5 = vadd.f32 %v1183_v4, %v1175_v3 }
 0x8b2   : > { %1196 = vst.msk [vmem:[#allocation4 + $0x8] sm:$0xff] %vm1194_vm15, %v1191_v5  ;;  %v1328_v7 = vpop.f32.mrf.mxu1 }
 0x8b3   : > { %v1334_v8 = vadd.f32 %v1328_v7, %v1226_v6 }
 0x8b5   : > { %1338 = vst.msk [vmem:[#allocation5 + $0x18] sm:$0xff] %vm1004_vm13, %v1334_v8 }
 0x8be   : > { %v1250_v14 = vpop.f32.mrf.mxu2  ;;  %v1276_v15 = vpop.f32.mrf.mxu3 }
 0x8bf   : > { %v1331_v16 = vadd.f32 %v1250_v14, %v1223_v13  ;;  %v1332_v17 = vadd.f32 %v1276_v15, %v1224_v12 }
 0x8c1   : > { %1335 = vst.msk [vmem:[#allocation5] sm:$0xff] %vm1004_vm13, %v1331_v16 }
 0x8c2   : > { %1336 = vst.msk [vmem:[#allocation5 + $0x8] sm:$0xff] %vm1004_vm13, %v1332_v17 }
 0x8cf   : > { %v1186_v20 = vpop.xlane.xlu0 %1185 }
 0x8d0   : > { %v1192_v21 = vadd.f32 %v1186_v20, %v1176_v19 }
 0x8d2   : > { %1197 = vst.msk [vmem:[#allocation4 + $0x10] sm:$0xff] %vm1194_vm15, %v1192_v21 }
 0x8d7   : > { %1346 = sbr.rel (%p1700_p1) target bundleno = 2543 (0x9ef), region = 84 }
 0x8d8   : > { %v1302_v24 = vpop.f32.mrf.mxu0 }
 0x8d9   : > { %v1333_v25 = vadd.f32 %v1302_v24, %v1225_v23 }
 0x8db   : > { %1337 = vst.msk [vmem:[#allocation5 + $0x10] sm:$0xff] %vm1004_vm13, %v1333_v25 }
 0x8dc   : > { %v1349_v26 = vld [vmem:[#allocation4 + $0x10] sm:$0xff]  ;;  %v1347_v28 = vld [vmem:[#allocation4] sm:$0xff]  ;;  %v1350_v29 = vld [vmem:[#allocation4 + $0x18] sm:$0xff]  ;;  %v2243_v30 = vmov 0  }
 0x8dd   : > { %1927 = vset.pattern.permute.xlu1 %v2243_v30  ;;  %1926 = vset.pattern.permute.xlu0 %v2243_v30  ;;  %1928 = vrcp.f32 %v1349_v26  ;;  %v1348_v27 = vld [vmem:[#allocation4 + $0x8] sm:$0xff]  ;;  %v1399_v49 = vld [vmem:[#allocation14 + $0x20] sm:$0xff]  ;;  %v1398_v51 = vld [vmem:[#allocation14 + $0x18] sm:$0xff] }
 0x8de   : > { %v1400_v31 = vld [vmem:[#allocation14 + $0x28] sm:$0xff]  ;;  %1930 = vrcp.f32 %v1347_v28  ;;  %v1395_v50 = vld [vmem:[#allocation14] sm:$0xff]  ;;  %v1402_v52 = vld [vmem:[#allocation14 + $0x38] sm:$0xff]  ;;  %1443 = vmatpush.msra.mxu1 %v1398_v51 }
 0x8df   : > { %1466 = vmatpush.msra.mxu2 %v1400_v31  ;;  %1932 = vrcp.f32 %v1350_v29  ;;  %v1396_v48 = vld [vmem:[#allocation14 + $0x8] sm:$0xff]  ;;  %1489 = vmatpush.msra.mxu3 %v1402_v52  ;;  %v1397_v53 = vld [vmem:[#allocation14 + $0x10] sm:$0xff]  ;;  %v1367_v56 = vld [vmem:[#allocation5] sm:$0xff] }
 0x8e0   : > { %1934 = vrcp.f32 %v1348_v27  ;;  %1420 = vmatpush.msra.mxu0 %v1396_v48  ;;  %v1401_v54 = vld [vmem:[#allocation14 + $0x30] sm:$0xff]  ;;  %1444 = vmatpush.msra.mxu1 %v1397_v53  ;;  %v1370_v61 = vld [vmem:[#allocation5 + $0x18] sm:$0xff]  ;;  %v1368_v62 = vld [vmem:[#allocation5 + $0x8] sm:$0xff] }
 0x8e1   : > { %1467 = vmatpush.msra.mxu2 %v1399_v49  ;;  %1490 = vmatpush.msra.mxu3 %v1401_v54 }
 0x8e2   : > { %1421 = vmatpush.msra.mxu0 %v1395_v50  ;;  %v1369_v55 = vld [vmem:[#allocation5 + $0x10] sm:$0xff] }
 0x8e3   : > { %v1929_v32 = vpop.eup %1928 }
 0x8e4   : > { %v1931_v33 = vpop.eup %1930  ;;  %v1357_v34 = vmul.f32 %v1929_v32, %v1349_v26 }
 0x8e5   : > { %v1933_v35 = vpop.eup %1932  ;;  %v1355_v36 = vmul.f32 %v1931_v33, %v1347_v28 }
 0x8e6   : > { %v1935_v37 = vpop.eup %1934  ;;  %v1361_v38 = vsub.f32 2.0, %v1357_v34  ;;  %v1358_v39 = vmul.f32 %v1933_v35, %v1350_v29 }
 0x8e7   : > { %v1359_v40 = vsub.f32 2.0, %v1355_v36  ;;  %v1356_v41 = vmul.f32 %v1935_v37, %v1348_v27 }
 0x8e8   : > { %v1365_v42 = vmul.f32 %v1929_v32, %v1361_v38  ;;  %v1362_v44 = vsub.f32 2.0, %v1358_v39 }
 0x8e9   : > { %v1363_v43 = vmul.f32 %v1931_v33, %v1359_v40  ;;  %v1360_v45 = vsub.f32 2.0, %v1356_v41 }
 0x8ea   : > { %1383 = vperm.xlu0 %1926, %v1365_v42   ;;  %v1366_v46 = vmul.f32 %v1933_v35, %v1362_v44 }
 0x8eb   : > { %1373 = vperm.xlu1 %1927, %v1363_v43   ;;  %v1364_v47 = vmul.f32 %v1935_v37, %v1360_v45 }
 0x8f2   : > { %1388 = vperm.xlu0 %1926, %v1366_v46  }
 0x8f3   : > { %1378 = vperm.xlu1 %1927, %v1364_v47  }
 0x95c   : > { %v1384_v57 = vpop.permute.xlu0 %1383 }
 0x95d   : > { %v1393_v58 = vmul.f32 %v1384_v57, %v1369_v55  ;;  %v1374_v59 = vpop.permute.xlu1 %1373 }
 0x95e   : > { %v1391_v60 = vmul.f32 %v1374_v59, %v1367_v56 }
 0x95f   : > { %1703 = vmatmul.msk.f32.vlgmr.msra.gmra.mxu2 %vm1004_vm13, %v1393_v58 }
 0x960   : > { %1701 = vmatmul.msk.f32.vlgmr.msra.gmra.mxu0 %vm1004_vm13, %v1391_v60 }
 0x964   : > { %v1389_v63 = vpop.permute.xlu0 %1388 }
 0x965   : > { %v1394_v0 = vmul.f32 %v1389_v63, %v1370_v61  ;;  %v1379_v1 = vpop.permute.xlu1 %1378 }
 0x966   : > { %v1392_v2 = vmul.f32 %v1379_v1, %v1368_v62 }
 0x967   : > { %1704 = vmatmul.msk.f32.vlgmr.msra.gmra.mxu3 %vm1004_vm13, %v1394_v0 }
 0x968   : > { %1702 = vmatmul.msk.f32.vlgmr.msra.gmra.mxu1 %vm1004_vm13, %v1392_v2 }
 0x9dd   : > { %v1423_v3 = vpop.f32.mrf.mxu0 }
 0x9de   : > { %v1495_v5 = vsel %vm928_vm8, %v1423_v3, 0.0 }
 0x9e2   : > { %v1469_v6 = vpop.f32.mrf.mxu2 }
 0x9e3   : > { %v1498_v9 = vsel %vm928_vm8, %v1469_v6, 0.0 }
 0x9e5   : > { %v1446_v4 = vpop.f32.mrf.mxu1 }
 0x9e6   : > { %v1496_v7 = vsel %vm928_vm8, %v1446_v4, 0.0 }
 0x9e7   : > { %v1497_v8 = vadd.f32 %v1496_v7, %v1495_v5 }
 0x9e9   : > { %v1499_v11 = vadd.f32 %v1498_v9, %v1497_v8 }
 0x9ea   : > { %v1492_v10 = vpop.f32.mrf.mxu3 }
 0x9eb   : > { %v1500_v12 = vsel %vm928_vm8, %v1492_v10, 0.0 }
 0x9ec   : > { %v1501_v13 = vadd.f32 %v1500_v12, %v1499_v11 }
 0x9ee   : > { %1502 = vst.msk [vmem:[%s453_s16] sm:$0xff] %vm928_vm8, %v1501_v13 }
 0x9ef PF: > { %s2760_s15 = sld [smem:[#allocation21_spill]]  ;;  %s1516_s18 = sshll.u32 %s453_s16, 4  ;;  %s1517_s18 = int_to_ptr.vmem [resolvable:$true] %s1516_s18 }
 0x9f0   : > { %s2761_s28 = sld [smem:[#allocation32_spill]]  ;;  %s1504_s7 = scalar_lea.sflag [#allocation8], %s396_s17 }
 0x9f5   : > { %s1706_s25 = sshll.u32 %s2760_s15, 3 }
 0x9f6   : > { %s1514_s22 = scalar_lea.hbm %s2761_s28, %s1706_s25  ;;  %s2106_s26 = scalar_lea.hbm %s2761_s28, 16 }
 0x9f7   : > { %s1518_s23 = sshll.u32 %s1514_s22, 4  ;;  %s1519_s23 = int_to_ptr.hbm [resolvable:$true] %s1518_s23 }
 0x9f8   : > { %s2100_s0 = sshra.s32 %s1519_s23, 4  ;;  %s2101_s0 = int_to_ptr.hbm [resolvable:$true] %s2100_s0 }
 0x9f9   : > { %s2102_s9 = scalar_lea.hbm %s2101_s0, 8  ;;  %p2107_p5 = scmp.lt.s32.totalorder %s2101_s0, %s2761_s28 }
 0x9fa   : > { %p2103_p12 = scmp.ne.s32.totalorder %s2101_s0, %s2102_s9  ;;  %p2108_p6 = scmp.lt.s32.totalorder %s2106_s26, %s2102_s9 }
 0x9fc   : > { %p2104_p13 = pnand %p2103_p12, %p2448_p2  ;;  %p2109_p7 = por %p2108_p6, %p2107_p5 }
 0x9fe   : > { %p2105_p4 = pneg %p2104_p13 }
 0xa00   : > { %p2110_p9 = pnand %p2109_p7, %p2105_p4 }
 0xa02   : > { %2113 = shalt.err (!%p2110_p9)
}
 0xa03   : > { %1725 = dma.vmem_to_hbm [thread:$0]  (%p2448_p2), %s1517_s18, 128, %s1519_s23, %s1504_s7  }
 0xa04 PF: > { %p1755_p10 = scmp.ge.s32.totalorder %s2220_s19, 2  ;;  %s1530_s17 = sand.u32 1, %s2180_s30  }
 0xa05   : > { %s1531_s24 = scalar_lea.sflag [#allocation8], %s1530_s17 }
 0xa06   : > { %p1745_p11 = pnand %p1755_p10, %p2452_p0 }
 0xa08   : > { %p1746_p8 = pneg %p1745_p11 }
 0xa0a   : > { %2175 = dma.done.wait (%p1746_p8), %s1531_s24, 128  }
 0xa0b   : > { %2177 = vsyncadd (%p1746_p8), %s1531_s24, 4294967168  ;;  %s29_s19 = sadd.s32 1, %s2220_s19   ;;  %s2762_s8 = sld [smem:[#allocation26_spill]] }
 0xa0c   : > { %p26_p3 = scmp.ge.s32.totalorder %s29_s19, 6   ;;  %s2763_s15 = sld [smem:[#allocation22_spill]] }
 0xa0d   : > { %s2764_s16 = sld [smem:[#allocation23_spill]]  ;;  %s2767_s30 = smov %s2184_s10 }
 0xa0e   : > { %s2765_s17 = sld [smem:[#allocation24_spill]]  ;;  %s2768_s10 = smov %s2188_s11 }
 0xa0f   : > { %s2766_s18 = sld [smem:[#allocation25_spill]]  ;;  %s2769_s11 = smov %s2431_s6 }
 0xa10   : > { %s2770_s12 = smov %s2196_s13  ;;  %s2771_s13 = smov %s2200_s14 }
 0xa11   : > { %s2772_s14 = smov %s2762_s8  ;;  %28 = sbr.rel (!%p26_p3) target bundleno = 19 (0x13), region = 134 }
 0xa16   :  { %1537 = vsyncpa [#allocation7], 1 }
 0xa17   :  { %1539 = vsyncpa [#allocation7 + $0x1], 1 }
 0xa18   :  { %1540 = vsyncpa [#allocation10], 1 }
 0xa19   :  { %1542 = vsyncpa [#allocation10 + $0x1], 1 }
 0xa1a   :  { %1543 = vsyncpa [#allocation13], 1 }
 0xa1b   :  { %1544 = vsyncpa [#allocation8], 1 }
 0xa1c   :  { %1546 = vsyncpa [#allocation8 + $0x1], 1 }

</bundles_post_ra>
